<compile_context>
chip_gen: v7x
topology: tpu7x:2x2x1
jax: 0.10.0
libtpu: 0.0.40
codegen_flags: <defaults>
</compile_context>

<pallas_src>
import functools

import jax
import jax.numpy as jnp
from jax.experimental import pallas as pl
from jax.experimental.pallas import tpu as pltpu

# ---- module constants (from gpt.py) ----
N_EMBD = 256          # n_embd
BLOCK_SIZE = 256      # block_size (only the [:T, :T] slice of tril matters)

NEG_INF = -1e30       # finite additive mask value (avoids NaN risk of -inf rows)


def mha_kernel(x_ref, wqkv_ref, wp_ref, bp_ref, o_ref, qkv_ref, cat_ref,
               *, num_heads, head_size):
    """One grid step = `block_b` batch elements: fused QKV + per-head attention + proj."""
    H, hs = num_heads, head_size
    HHS = H * hs
    Bb, T, C = x_ref.shape

    # Fused QKV projection for all heads and all fused batches:
    # (Bb*T, C) x (C, 3*H*hs) -> (Bb*T, 3*H*hs), f32 accumulate; park as bf16 in VMEM.
    x2 = x_ref[...].reshape(Bb * T, C).astype(jnp.bfloat16)
    qkv = jnp.dot(x2, wqkv_ref[...], preferred_element_type=jnp.float32)
    qkv_ref[...] = qkv.reshape(Bb, T, 3 * HHS).astype(jnp.bfloat16)

    # Additive causal mask built in-kernel (no HBM traffic / double buffering).
    row = jax.lax.broadcasted_iota(jnp.int32, (T, T), 0)
    col = jax.lax.broadcasted_iota(jnp.int32, (T, T), 1)
    mask = jnp.where(row >= col, 0.0, NEG_INF).astype(jnp.float32)      # (T, T)

    for h in range(H):            # H small & static; lane-dim offsets must stay static
        q = qkv_ref[:, :, h * hs:(h + 1) * hs]                          # (Bb, T, hs), bf16, pre-scaled
        k = qkv_ref[:, :, HHS + h * hs:HHS + (h + 1) * hs]
        v = qkv_ref[:, :, 2 * HHS + h * hs:2 * HHS + (h + 1) * hs]

        # batched q.k^T on the MXU (contract head dim), f32 accumulate
        wei = jnp.einsum('bqd,bkd->bqk', q, k,
                         preferred_element_type=jnp.float32)            # (Bb, T, T)
        wei = wei + mask                                                # broadcast over batch

        # numerically-stable softmax, f32 (v5e has no bf16 VPU/EUP path)
        wei = wei - jnp.max(wei, axis=-1, keepdims=True)
        p = jnp.exp(wei)
        p = p * pl.reciprocal(jnp.sum(p, axis=-1, keepdims=True), approx=True)

        # head output straight into the lane-dense bf16 concat scratch (no concatenate)
        cat_ref[:, :, h * hs:(h + 1) * hs] = jnp.einsum(
            'bqk,bkd->bqd', p.astype(jnp.bfloat16), v,
            preferred_element_type=jnp.float32).astype(jnp.bfloat16)

    # Output projection over the fused block: (Bb*T, H*hs) x (H*hs, C) -> (Bb*T, C) + bias.
    out = jnp.dot(cat_ref[...].reshape(Bb * T, HHS), wp_ref[...],
                  preferred_element_type=jnp.float32)
    out = out + bp_ref[...]
    o_ref[...] = out.reshape(Bb, T, C).astype(o_ref.dtype)


def _pick_block_b(batch, seq, max_rows=512):
    """Largest divisor of `batch` keeping block_b*seq <= max_rows (VMEM bound);
    prefer leaving >= 2 grid steps (v7x megacore) when MXU M-fill stays decent."""
    best = 1
    for d in range(1, batch + 1):
        if batch % d == 0 and d * seq <= max_rows:
            best = d
    if batch // best < 2:
        for d in range(best - 1, 0, -1):
            if batch % d == 0 and batch // d >= 2 and d * seq >= 128:
                return d
    return best


def multi_head_attention(x, wq, wk, wv, wp, bp, *, block_b=None):
    """x: (B,T,C);  wq/wk/wv: (H, hs, C) (PyTorch Linear layout);  wp: (C, H*hs);  bp: (C,)."""
    B, T, C = x.shape
    H, hs, _ = wq.shape
    HHS = H * hs
    scale = jnp.float32(C) ** -0.5            # PyTorch module uses C == n_embd (not head_size)

    if block_b is None:
        block_b = _pick_block_b(B, T)
    assert B % block_b == 0, "block_b must divide batch"

    # Pre-transpose & stack projection weights so the contraction axis is C; fold the
    # attention scale into the Q weights; cast MXU weight operands to bf16.
    w_q = (wq * scale).reshape(HHS, C).T                   # (C, H*hs)
    w_k = wk.reshape(HHS, C).T                             # (C, H*hs)
    w_v = wv.reshape(HHS, C).T                             # (C, H*hs)
    w_qkv = jnp.concatenate([w_q, w_k, w_v], axis=1).astype(jnp.bfloat16)  # (C, 3*H*hs)
    wp_t = wp.T.astype(jnp.bfloat16)                       # (H*hs, C)
    bp2 = bp.reshape(1, C).astype(jnp.float32)

    kernel = functools.partial(mha_kernel, num_heads=H, head_size=hs)

    return pl.pallas_call(
        kernel,
        out_shape=jax.ShapeDtypeStruct((B, T, C), x.dtype),
        grid_spec=pltpu.PrefetchScalarGridSpec(
            num_scalar_prefetch=0,
            grid=(B // block_b,),
            in_specs=[
                pl.BlockSpec((block_b, T, C), lambda b: (b, 0, 0)),   # fused batch block of x
                pl.BlockSpec((C, 3 * HHS), lambda b: (0, 0)),         # fused QKV weight (bf16)
                pl.BlockSpec((HHS, C), lambda b: (0, 0)),             # proj weight^T (bf16)
                pl.BlockSpec((1, C), lambda b: (0, 0)),               # proj bias
            ],
            out_specs=pl.BlockSpec((block_b, T, C), lambda b: (b, 0, 0)),
            scratch_shapes=[
                pltpu.VMEM((block_b, T, 3 * HHS), jnp.bfloat16),      # parked QKV (bf16)
                pltpu.VMEM((block_b, T, HHS), jnp.bfloat16),          # concatenated head outs
            ],
        ),
        compiler_params=pltpu.CompilerParams(
            dimension_semantics=("parallel",),
            vmem_limit_bytes=32 * 1024 * 1024),
    )(x, w_qkv, wp_t, bp2)


def reference(x, wq, wk, wv, wp, bp):
    """Pure-JAX (f32) reference mirroring the PyTorch forward (eval mode)."""
    B, T, C = x.shape
    H = wq.shape[0]
    outs = []
    for h in range(H):
        q = x @ wq[h].T
        k = x @ wk[h].T
        v = x @ wv[h].T
        wei = (q @ jnp.swapaxes(k, -2, -1)) * (C ** -0.5)
        m = jnp.tril(jnp.ones((T, T), dtype=bool))
        wei = jnp.where(m, wei, -jnp.inf)
        wei = jax.nn.softmax(wei, axis=-1)
        outs.append(wei @ v)
    cat = jnp.concatenate(outs, axis=-1)
    return cat @ wp.T + bp


if __name__ == "__main__":
    # small-but-consistent shapes: n_embd = 256 (fixed by module), seq T = 8,
    # batch B = 2, num_heads = 4, head_size = 64 (so H*hs == n_embd for proj)
    B, T = 2, 8
    H, HS = 4, 64
    C = N_EMBD

    key = jax.random.PRNGKey(0)
    kx, kq, kk, kv, kp, kb = jax.random.split(key, 6)

    x = jax.random.normal(kx, (B, T, C), dtype=jnp.float32)
    # deterministic "Linear"-style weights (scaled normal)
    wq = jax.random.normal(kq, (H, HS, C), dtype=jnp.float32) * (C ** -0.5)
    wk = jax.random.normal(kk, (H, HS, C), dtype=jnp.float32) * (C ** -0.5)
    wv = jax.random.normal(kv, (H, HS, C), dtype=jnp.float32) * (C ** -0.5)
    wp = jax.random.normal(kp, (C, H * HS), dtype=jnp.float32) * ((H * HS) ** -0.5)
    bp = jax.random.normal(kb, (C,), dtype=jnp.float32) * 0.01

    out = multi_head_attention(x, wq, wk, wv, wp, bp)
    out = jax.block_until_ready(out)

    ref = reference(x, wq, wk, wv, wp, bp)
    assert out.shape == (B, T, C)
    # tolerance reflects bf16 MXU operands (f32 accumulate) + approx reciprocal
    assert jnp.allclose(out, ref, atol=5e-2, rtol=5e-2), "mismatch vs reference"

    print("KERNEL_OK")
</pallas_src>

<mosaic_0001>
module attributes {stable_mosaic.version = 11 : i64} {
  func.func @mha_kernel(%arg0: i32, %arg1: memref<2x8x256xf32, #tpu.memory_space<vmem>>, %arg2: memref<256x768xbf16, #tpu.memory_space<vmem>>, %arg3: memref<256x256xbf16, #tpu.memory_space<vmem>>, %arg4: memref<1x256xf32, #tpu.memory_space<vmem>>, %arg5: memref<2x8x256xf32, #tpu.memory_space<vmem>>, %arg6: memref<2x8x768xbf16, #tpu.memory_space<vmem>>, %arg7: memref<2x8x256xbf16, #tpu.memory_space<vmem>>) attributes {dimension_semantics = [#tpu.dimension_semantics<parallel>], iteration_bounds = array<i64: 1>, scalar_prefetch = 0 : i64, scratch_operands = 2 : i64, tpu.core_type = #tpu.core_type<tc>, window_params = [{transform_indices = @transform_0, window_bounds = array<i64: 2, 8, 256>}, {pipeline_mode = #tpu.pipeline_mode<synchronous>, transform_indices = @transform_1, window_bounds = array<i64: 256, 768>}, {pipeline_mode = #tpu.pipeline_mode<synchronous>, transform_indices = @transform_2, window_bounds = array<i64: 256, 256>}, {pipeline_mode = #tpu.pipeline_mode<synchronous>, transform_indices = @transform_3, window_bounds = array<i64: 1, 256>}, {transform_indices = @transform_4, window_bounds = array<i64: 2, 8, 256>}]} {
    %c0 = arith.constant 0 : index
    %c0_0 = arith.constant 0 : index
    %c0_1 = arith.constant 0 : index
    %0 = vector.load %arg1[%c0, %c0_0, %c0_1] : memref<2x8x256xf32, #tpu.memory_space<vmem>>, vector<2x8x256xf32>
    %1 = vector.shape_cast %0 : vector<2x8x256xf32> to vector<16x256xf32>
    %2 = arith.truncf %1 : vector<16x256xf32> to vector<16x256xbf16>
    %c0_2 = arith.constant 0 : index
    %c0_3 = arith.constant 0 : index
    %3 = vector.load %arg2[%c0_2, %c0_3] : memref<256x768xbf16, #tpu.memory_space<vmem>>, vector<256x768xbf16>
    %cst = arith.constant dense<0.000000e+00> : vector<16x768xf32>
    %4 = tpu.matmul %2, %3, %cst {dimension_numbers = #tpu.dot_dimension_numbers<[1], [0], [0], [1], [0, 0, 1, 1], [], []>} : vector<16x256xbf16>, vector<256x768xbf16>, vector<16x768xf32> -> vector<16x768xf32>
    %5 = vector.shape_cast %4 : vector<16x768xf32> to vector<2x8x768xf32>
    %6 = arith.truncf %5 : vector<2x8x768xf32> to vector<2x8x768xbf16>
    %c0_4 = arith.constant 0 : index
    %c0_5 = arith.constant 0 : index
    %c0_6 = arith.constant 0 : index
    %7 = vector.load %arg6[%c0_4, %c0_5, %c0_6] : memref<2x8x768xbf16, #tpu.memory_space<vmem>>, vector<2x8x768xbf16>
    tpu.vector_store %arg6[%c0_4, %c0_5, %c0_6], %6 {strides = array<i32>} : memref<2x8x768xbf16, #tpu.memory_space<vmem>>, vector<2x8x768xbf16>,
    %8 = tpu.iota {dimensions = array<i32: 0>} : vector<8x8xi32>
    %9 = tpu.iota {dimensions = array<i32: 1>} : vector<8x8xi32>
    %10 = arith.cmpi sge, %8, %9 : vector<8x8xi32>
    %cst_7 = arith.constant 0.000000e+00 : f32
    %cst_8 = arith.constant -1.000000e+30 : f32
    %11 = vector.broadcast %cst_7 : f32 to vector<8x8xf32>
    %12 = vector.broadcast %cst_8 : f32 to vector<8x8xf32>
    %13 = arith.select %10, %11, %12 : vector<8x8xi1>, vector<8x8xf32>
    %c0_9 = arith.constant 0 : index
    %c0_10 = arith.constant 0 : index
    %c0_11 = arith.constant 0 : index
    %14 = vector.load %arg6[%c0_9, %c0_10, %c0_11] : memref<2x8x768xbf16, #tpu.memory_space<vmem>>, vector<2x8x64xbf16>
    %c0_12 = arith.constant 0 : index
    %c0_13 = arith.constant 0 : index
    %c256 = arith.constant 256 : index
    %15 = vector.load %arg6[%c0_12, %c0_13, %c256] : memref<2x8x768xbf16, #tpu.memory_space<vmem>>, vector<2x8x64xbf16>
    %c0_14 = arith.constant 0 : index
    %c0_15 = arith.constant 0 : index
    %c512 = arith.constant 512 : index
    %16 = vector.load %arg6[%c0_14, %c0_15, %c512] : memref<2x8x768xbf16, #tpu.memory_space<vmem>>, vector<2x8x64xbf16>
    "tpu.trace_start"() <{level = 10 : i32, message = "bqd,bkd->bqk"}> : () -> ()
    %cst_16 = arith.constant dense<0.000000e+00> : vector<2x8x8xf32>
    %17 = tpu.matmul %14, %15, %cst_16 {dimension_numbers = #tpu.dot_dimension_numbers<[2], [2], [1], [1], [0, 0, 0, 1, 1, 1], [0], [0]>} : vector<2x8x64xbf16>, vector<2x8x64xbf16>, vector<2x8x8xf32> -> vector<2x8x8xf32>
    "tpu.trace_stop"() : () -> ()
    %18 = vector.shape_cast %13 : vector<8x8xf32> to vector<1x8x8xf32>
    %19 = vector.broadcast %18 : vector<1x8x8xf32> to vector<2x8x8xf32>
    %20 = arith.addf %17, %19 : vector<2x8x8xf32>
    %cst_17 = arith.constant dense<0xFF800000> : vector<2x8xf32>
    %21 = vector.multi_reduction <maximumf>, %20, %cst_17 [2] : vector<2x8x8xf32> to vector<2x8xf32>
    %22 = vector.shape_cast %21 : vector<2x8xf32> to vector<2x8x1xf32>
    %23 = vector.broadcast %22 : vector<2x8x1xf32> to vector<2x8x8xf32>
    %24 = arith.subf %20, %23 : vector<2x8x8xf32>
    %25 = math.exp %24 : vector<2x8x8xf32>
    %cst_18 = arith.constant dense<0.000000e+00> : vector<2x8xf32>
    %26 = vector.multi_reduction <add>, %25, %cst_18 [2] : vector<2x8x8xf32> to vector<2x8xf32>
    %27 = vector.shape_cast %26 : vector<2x8xf32> to vector<2x8x1xf32>
    %28 = tpu.reciprocal %27 {approx = true} : vector<2x8x1xf32> -> vector<2x8x1xf32>
    %29 = vector.broadcast %28 : vector<2x8x1xf32> to vector<2x8x8xf32>
    %30 = arith.mulf %25, %29 : vector<2x8x8xf32>
    %31 = arith.truncf %30 : vector<2x8x8xf32> to vector<2x8x8xbf16>
    "tpu.trace_start"() <{level = 10 : i32, message = "bqk,bkd->bqd"}> : () -> ()
    %cst_19 = arith.constant dense<0.000000e+00> : vector<2x8x64xf32>
    %32 = tpu.matmul %31, %16, %cst_19 {dimension_numbers = #tpu.dot_dimension_numbers<[2], [1], [1], [2], [0, 0, 0, 1, 1, 2], [0], [0]>} : vector<2x8x8xbf16>, vector<2x8x64xbf16>, vector<2x8x64xf32> -> vector<2x8x64xf32>
    "tpu.trace_stop"() : () -> ()
    %33 = arith.truncf %32 : vector<2x8x64xf32> to vector<2x8x64xbf16>
    %c0_20 = arith.constant 0 : index
    %c0_21 = arith.constant 0 : index
    %c0_22 = arith.constant 0 : index
    %34 = vector.load %arg7[%c0_20, %c0_21, %c0_22] : memref<2x8x256xbf16, #tpu.memory_space<vmem>>, vector<2x8x64xbf16>
    tpu.vector_store %arg7[%c0_20, %c0_21, %c0_22], %33 {strides = array<i32>} : memref<2x8x256xbf16, #tpu.memory_space<vmem>>, vector<2x8x64xbf16>,
    %c0_23 = arith.constant 0 : index
    %c0_24 = arith.constant 0 : index
    %c64 = arith.constant 64 : index
    %35 = vector.load %arg6[%c0_23, %c0_24, %c64] : memref<2x8x768xbf16, #tpu.memory_space<vmem>>, vector<2x8x64xbf16>
    %c0_25 = arith.constant 0 : index
    %c0_26 = arith.constant 0 : index
    %c320 = arith.constant 320 : index
    %36 = vector.load %arg6[%c0_25, %c0_26, %c320] : memref<2x8x768xbf16, #tpu.memory_space<vmem>>, vector<2x8x64xbf16>
    %c0_27 = arith.constant 0 : index
    %c0_28 = arith.constant 0 : index
    %c576 = arith.constant 576 : index
    %37 = vector.load %arg6[%c0_27, %c0_28, %c576] : memref<2x8x768xbf16, #tpu.memory_space<vmem>>, vector<2x8x64xbf16>
    "tpu.trace_start"() <{level = 10 : i32, message = "bqd,bkd->bqk"}> : () -> ()
    %cst_29 = arith.constant dense<0.000000e+00> : vector<2x8x8xf32>
    %38 = tpu.matmul %35, %36, %cst_29 {dimension_numbers = #tpu.dot_dimension_numbers<[2], [2], [1], [1], [0, 0, 0, 1, 1, 1], [0], [0]>} : vector<2x8x64xbf16>, vector<2x8x64xbf16>, vector<2x8x8xf32> -> vector<2x8x8xf32>
    "tpu.trace_stop"() : () -> ()
    %39 = vector.shape_cast %13 : vector<8x8xf32> to vector<1x8x8xf32>
    %40 = vector.broadcast %39 : vector<1x8x8xf32> to vector<2x8x8xf32>
    %41 = arith.addf %38, %40 : vector<2x8x8xf32>
    %cst_30 = arith.constant dense<0xFF800000> : vector<2x8xf32>
    %42 = vector.multi_reduction <maximumf>, %41, %cst_30 [2] : vector<2x8x8xf32> to vector<2x8xf32>
    %43 = vector.shape_cast %42 : vector<2x8xf32> to vector<2x8x1xf32>
    %44 = vector.broadcast %43 : vector<2x8x1xf32> to vector<2x8x8xf32>
    %45 = arith.subf %41, %44 : vector<2x8x8xf32>
    %46 = math.exp %45 : vector<2x8x8xf32>
    %cst_31 = arith.constant dense<0.000000e+00> : vector<2x8xf32>
    %47 = vector.multi_reduction <add>, %46, %cst_31 [2] : vector<2x8x8xf32> to vector<2x8xf32>
    %48 = vector.shape_cast %47 : vector<2x8xf32> to vector<2x8x1xf32>
    %49 = tpu.reciprocal %48 {approx = true} : vector<2x8x1xf32> -> vector<2x8x1xf32>
    %50 = vector.broadcast %49 : vector<2x8x1xf32> to vector<2x8x8xf32>
    %51 = arith.mulf %46, %50 : vector<2x8x8xf32>
    %52 = arith.truncf %51 : vector<2x8x8xf32> to vector<2x8x8xbf16>
    "tpu.trace_start"() <{level = 10 : i32, message = "bqk,bkd->bqd"}> : () -> ()
    %cst_32 = arith.constant dense<0.000000e+00> : vector<2x8x64xf32>
    %53 = tpu.matmul %52, %37, %cst_32 {dimension_numbers = #tpu.dot_dimension_numbers<[2], [1], [1], [2], [0, 0, 0, 1, 1, 2], [0], [0]>} : vector<2x8x8xbf16>, vector<2x8x64xbf16>, vector<2x8x64xf32> -> vector<2x8x64xf32>
    "tpu.trace_stop"() : () -> ()
    %54 = arith.truncf %53 : vector<2x8x64xf32> to vector<2x8x64xbf16>
    %c0_33 = arith.constant 0 : index
    %c0_34 = arith.constant 0 : index
    %c64_35 = arith.constant 64 : index
    %55 = vector.load %arg7[%c0_33, %c0_34, %c64_35] : memref<2x8x256xbf16, #tpu.memory_space<vmem>>, vector<2x8x64xbf16>
    tpu.vector_store %arg7[%c0_33, %c0_34, %c64_35], %54 {strides = array<i32>} : memref<2x8x256xbf16, #tpu.memory_space<vmem>>, vector<2x8x64xbf16>,
    %c0_36 = arith.constant 0 : index
    %c0_37 = arith.constant 0 : index
    %c128 = arith.constant 128 : index
    %56 = vector.load %arg6[%c0_36, %c0_37, %c128] : memref<2x8x768xbf16, #tpu.memory_space<vmem>>, vector<2x8x64xbf16>
    %c0_38 = arith.constant 0 : index
    %c0_39 = arith.constant 0 : index
    %c384 = arith.constant 384 : index
    %57 = vector.load %arg6[%c0_38, %c0_39, %c384] : memref<2x8x768xbf16, #tpu.memory_space<vmem>>, vector<2x8x64xbf16>
    %c0_40 = arith.constant 0 : index
    %c0_41 = arith.constant 0 : index
    %c640 = arith.constant 640 : index
    %58 = vector.load %arg6[%c0_40, %c0_41, %c640] : memref<2x8x768xbf16, #tpu.memory_space<vmem>>, vector<2x8x64xbf16>
    "tpu.trace_start"() <{level = 10 : i32, message = "bqd,bkd->bqk"}> : () -> ()
    %cst_42 = arith.constant dense<0.000000e+00> : vector<2x8x8xf32>
    %59 = tpu.matmul %56, %57, %cst_42 {dimension_numbers = #tpu.dot_dimension_numbers<[2], [2], [1], [1], [0, 0, 0, 1, 1, 1], [0], [0]>} : vector<2x8x64xbf16>, vector<2x8x64xbf16>, vector<2x8x8xf32> -> vector<2x8x8xf32>
    "tpu.trace_stop"() : () -> ()
    %60 = vector.shape_cast %13 : vector<8x8xf32> to vector<1x8x8xf32>
    %61 = vector.broadcast %60 : vector<1x8x8xf32> to vector<2x8x8xf32>
    %62 = arith.addf %59, %61 : vector<2x8x8xf32>
    %cst_43 = arith.constant dense<0xFF800000> : vector<2x8xf32>
    %63 = vector.multi_reduction <maximumf>, %62, %cst_43 [2] : vector<2x8x8xf32> to vector<2x8xf32>
    %64 = vector.shape_cast %63 : vector<2x8xf32> to vector<2x8x1xf32>
    %65 = vector.broadcast %64 : vector<2x8x1xf32> to vector<2x8x8xf32>
    %66 = arith.subf %62, %65 : vector<2x8x8xf32>
    %67 = math.exp %66 : vector<2x8x8xf32>
    %cst_44 = arith.constant dense<0.000000e+00> : vector<2x8xf32>
    %68 = vector.multi_reduction <add>, %67, %cst_44 [2] : vector<2x8x8xf32> to vector<2x8xf32>
    %69 = vector.shape_cast %68 : vector<2x8xf32> to vector<2x8x1xf32>
    %70 = tpu.reciprocal %69 {approx = true} : vector<2x8x1xf32> -> vector<2x8x1xf32>
    %71 = vector.broadcast %70 : vector<2x8x1xf32> to vector<2x8x8xf32>
    %72 = arith.mulf %67, %71 : vector<2x8x8xf32>
    %73 = arith.truncf %72 : vector<2x8x8xf32> to vector<2x8x8xbf16>
    "tpu.trace_start"() <{level = 10 : i32, message = "bqk,bkd->bqd"}> : () -> ()
    %cst_45 = arith.constant dense<0.000000e+00> : vector<2x8x64xf32>
    %74 = tpu.matmul %73, %58, %cst_45 {dimension_numbers = #tpu.dot_dimension_numbers<[2], [1], [1], [2], [0, 0, 0, 1, 1, 2], [0], [0]>} : vector<2x8x8xbf16>, vector<2x8x64xbf16>, vector<2x8x64xf32> -> vector<2x8x64xf32>
    "tpu.trace_stop"() : () -> ()
    %75 = arith.truncf %74 : vector<2x8x64xf32> to vector<2x8x64xbf16>
    %c0_46 = arith.constant 0 : index
    %c0_47 = arith.constant 0 : index
    %c128_48 = arith.constant 128 : index
    %76 = vector.load %arg7[%c0_46, %c0_47, %c128_48] : memref<2x8x256xbf16, #tpu.memory_space<vmem>>, vector<2x8x64xbf16>
    tpu.vector_store %arg7[%c0_46, %c0_47, %c128_48], %75 {strides = array<i32>} : memref<2x8x256xbf16, #tpu.memory_space<vmem>>, vector<2x8x64xbf16>,
    %c0_49 = arith.constant 0 : index
    %c0_50 = arith.constant 0 : index
    %c192 = arith.constant 192 : index
    %77 = vector.load %arg6[%c0_49, %c0_50, %c192] : memref<2x8x768xbf16, #tpu.memory_space<vmem>>, vector<2x8x64xbf16>
    %c0_51 = arith.constant 0 : index
    %c0_52 = arith.constant 0 : index
    %c448 = arith.constant 448 : index
    %78 = vector.load %arg6[%c0_51, %c0_52, %c448] : memref<2x8x768xbf16, #tpu.memory_space<vmem>>, vector<2x8x64xbf16>
    %c0_53 = arith.constant 0 : index
    %c0_54 = arith.constant 0 : index
    %c704 = arith.constant 704 : index
    %79 = vector.load %arg6[%c0_53, %c0_54, %c704] : memref<2x8x768xbf16, #tpu.memory_space<vmem>>, vector<2x8x64xbf16>
    "tpu.trace_start"() <{level = 10 : i32, message = "bqd,bkd->bqk"}> : () -> ()
    %cst_55 = arith.constant dense<0.000000e+00> : vector<2x8x8xf32>
    %80 = tpu.matmul %77, %78, %cst_55 {dimension_numbers = #tpu.dot_dimension_numbers<[2], [2], [1], [1], [0, 0, 0, 1, 1, 1], [0], [0]>} : vector<2x8x64xbf16>, vector<2x8x64xbf16>, vector<2x8x8xf32> -> vector<2x8x8xf32>
    "tpu.trace_stop"() : () -> ()
    %81 = vector.shape_cast %13 : vector<8x8xf32> to vector<1x8x8xf32>
    %82 = vector.broadcast %81 : vector<1x8x8xf32> to vector<2x8x8xf32>
    %83 = arith.addf %80, %82 : vector<2x8x8xf32>
    %cst_56 = arith.constant dense<0xFF800000> : vector<2x8xf32>
    %84 = vector.multi_reduction <maximumf>, %83, %cst_56 [2] : vector<2x8x8xf32> to vector<2x8xf32>
    %85 = vector.shape_cast %84 : vector<2x8xf32> to vector<2x8x1xf32>
    %86 = vector.broadcast %85 : vector<2x8x1xf32> to vector<2x8x8xf32>
    %87 = arith.subf %83, %86 : vector<2x8x8xf32>
    %88 = math.exp %87 : vector<2x8x8xf32>
    %cst_57 = arith.constant dense<0.000000e+00> : vector<2x8xf32>
    %89 = vector.multi_reduction <add>, %88, %cst_57 [2] : vector<2x8x8xf32> to vector<2x8xf32>
    %90 = vector.shape_cast %89 : vector<2x8xf32> to vector<2x8x1xf32>
    %91 = tpu.reciprocal %90 {approx = true} : vector<2x8x1xf32> -> vector<2x8x1xf32>
    %92 = vector.broadcast %91 : vector<2x8x1xf32> to vector<2x8x8xf32>
    %93 = arith.mulf %88, %92 : vector<2x8x8xf32>
    %94 = arith.truncf %93 : vector<2x8x8xf32> to vector<2x8x8xbf16>
    "tpu.trace_start"() <{level = 10 : i32, message = "bqk,bkd->bqd"}> : () -> ()
    %cst_58 = arith.constant dense<0.000000e+00> : vector<2x8x64xf32>
    %95 = tpu.matmul %94, %79, %cst_58 {dimension_numbers = #tpu.dot_dimension_numbers<[2], [1], [1], [2], [0, 0, 0, 1, 1, 2], [0], [0]>} : vector<2x8x8xbf16>, vector<2x8x64xbf16>, vector<2x8x64xf32> -> vector<2x8x64xf32>
    "tpu.trace_stop"() : () -> ()
    %96 = arith.truncf %95 : vector<2x8x64xf32> to vector<2x8x64xbf16>
    %c0_59 = arith.constant 0 : index
    %c0_60 = arith.constant 0 : index
    %c192_61 = arith.constant 192 : index
    %97 = vector.load %arg7[%c0_59, %c0_60, %c192_61] : memref<2x8x256xbf16, #tpu.memory_space<vmem>>, vector<2x8x64xbf16>
    tpu.vector_store %arg7[%c0_59, %c0_60, %c192_61], %96 {strides = array<i32>} : memref<2x8x256xbf16, #tpu.memory_space<vmem>>, vector<2x8x64xbf16>,
    %c0_62 = arith.constant 0 : index
    %c0_63 = arith.constant 0 : index
    %c0_64 = arith.constant 0 : index
    %98 = vector.load %arg7[%c0_62, %c0_63, %c0_64] : memref<2x8x256xbf16, #tpu.memory_space<vmem>>, vector<2x8x256xbf16>
    %99 = vector.shape_cast %98 : vector<2x8x256xbf16> to vector<16x256xbf16>
    %c0_65 = arith.constant 0 : index
    %c0_66 = arith.constant 0 : index
    %100 = vector.load %arg3[%c0_65, %c0_66] : memref<256x256xbf16, #tpu.memory_space<vmem>>, vector<256x256xbf16>
    %cst_67 = arith.constant dense<0.000000e+00> : vector<16x256xf32>
    %101 = tpu.matmul %99, %100, %cst_67 {dimension_numbers = #tpu.dot_dimension_numbers<[1], [0], [0], [1], [0, 0, 1, 1], [], []>} : vector<16x256xbf16>, vector<256x256xbf16>, vector<16x256xf32> -> vector<16x256xf32>
    %c0_68 = arith.constant 0 : index
    %c0_69 = arith.constant 0 : index
    %102 = vector.load %arg4[%c0_68, %c0_69] : memref<1x256xf32, #tpu.memory_space<vmem>>, vector<1x256xf32>
    %103 = vector.broadcast %102 : vector<1x256xf32> to vector<16x256xf32>
    %104 = arith.addf %101, %103 : vector<16x256xf32>
    %105 = vector.shape_cast %104 : vector<16x256xf32> to vector<2x8x256xf32>
    %c0_70 = arith.constant 0 : index
    %c0_71 = arith.constant 0 : index
    %c0_72 = arith.constant 0 : index
    %106 = vector.load %arg5[%c0_70, %c0_71, %c0_72] : memref<2x8x256xf32, #tpu.memory_space<vmem>>, vector<2x8x256xf32>
    tpu.vector_store %arg5[%c0_70, %c0_71, %c0_72], %105 {strides = array<i32>} : memref<2x8x256xf32, #tpu.memory_space<vmem>>, vector<2x8x256xf32>,
    return
  }
  func.func @transform_0(%arg0: i32) -> (i32, i32, i32) {
    %c0_i32 = arith.constant 0 : i32
    %c0_i32_0 = arith.constant 0 : i32
    %c0_i32_1 = arith.constant 0 : i32
    return %arg0, %c0_i32, %c0_i32_0 : i32, i32, i32
  }
  func.func @transform_1(%arg0: i32) -> (i32, i32) {
    %c0_i32 = arith.constant 0 : i32
    %c0_i32_0 = arith.constant 0 : i32
    %c0_i32_1 = arith.constant 0 : i32
    return %c0_i32, %c0_i32_0 : i32, i32
  }
  func.func @transform_2(%arg0: i32) -> (i32, i32) {
    %c0_i32 = arith.constant 0 : i32
    %c0_i32_0 = arith.constant 0 : i32
    %c0_i32_1 = arith.constant 0 : i32
    return %c0_i32, %c0_i32_0 : i32, i32
  }
  func.func @transform_3(%arg0: i32) -> (i32, i32) {
    %c0_i32 = arith.constant 0 : i32
    %c0_i32_0 = arith.constant 0 : i32
    %c0_i32_1 = arith.constant 0 : i32
    return %c0_i32, %c0_i32_0 : i32, i32
  }
  func.func @transform_4(%arg0: i32) -> (i32, i32, i32) {
    %c0_i32 = arith.constant 0 : i32
    %c0_i32_0 = arith.constant 0 : i32
    %c0_i32_1 = arith.constant 0 : i32
    return %arg0, %c0_i32, %c0_i32_0 : i32, i32, i32
  }
}

</mosaic_0001>

<bundles_post_ra>
// kernel: tpu_custom_call.1
= control target key start
LH: loop header
LB: loop body
LE: loop exit
PB: predicated region body
PF: predicated region fallthrough
CT: control target
= control target key end

     0   :  { %9 = vsyncpa [#allocation5], 0  ;;  %s2970_s0 = inlined_call_operand.hbm [shape: f32[2,8,256], index: 0, kind: input, shape index: {}]   ;;  %s2971_s1 = inlined_call_operand.hbm [shape: bf16[256,768], index: 1, kind: input, shape index: {}]   ;;  %s2972_s2 = inlined_call_operand.hbm [shape: bf16[256,256], index: 2, kind: input, shape index: {}]   ;;  %s2973_s3 = inlined_call_operand.vmem [shape: f32[1,256], index: 3, kind: input, shape index: {}]   ;;  %s2974_s4 = inlined_call_operand.hbm [shape: f32[2,8,256], index: 4, kind: output, shape index: {}]  }
   0x1   :  { %10 = vsyncpa [#allocation8], 0 }
   0x2   :  { %11 = vsyncpa [#allocation6], 0  ;;  %s2726_s15 = smov [#allocation7]   ;;  %s2632_s19 = scalar_lea.hbm %s2971_s1, 12288 }
   0x3   :  { %s29_s16 = sshll.u32 %s2726_s15, 4  ;;  %p2633_p0 = scmp.ne.s32.totalorder %s2971_s1, %s2632_s19  ;;  %s30_s16 = int_to_ptr.vmem [resolvable:$true] %s29_s16 }
   0x4   :  { %p2636_p1 = scmp.lt.u32.totalorder %s2632_s19, %s2971_s1 }
   0x6   :  { %p2638_p2 = pnand %p2636_p1, %p2633_p0 }
   0x8   :  { %2641 = shalt.err (!%p2638_p2)
}
   0x9   :  { %s2642_s24 = scalar_lea.vmem %s30_s16, 12288  ;;  %p2647_p4 = scmp.lt.s32.totalorder %s30_s16, %s30_s16 }
   0xa   :  { %p2643_p3 = scmp.ne.s32.totalorder %s30_s16, %s2642_s24  ;;  %p2648_p5 = scmp.lt.s32.totalorder %s2642_s24, %s2642_s24 }
   0xc   :  { %p2649_p6 = por %p2648_p5, %p2647_p4 }
   0xe   :  { %p2650_p7 = pnand %p2649_p6, %p2643_p3 }
  0x10   :  { %2653 = shalt.err (!%p2650_p7)
}
  0x11   :  { %s2727_s25 = smov 384   ;;  %s2728_s26 = smov 24  }
  0x12   :  { %35 = dma.hbm_to_vmem [thread:$0]  %s2971_s1, 12288, %s30_s16, [#allocation8], %s2727_s25, %s2727_s25, %s2728_s26  }
  0x13   :  { %s2729_s29 = smov [#allocation4]   ;;  %s2654_s7 = scalar_lea.hbm %s2970_s0, 512 }
  0x14   :  { %s17_s30 = sshll.u32 %s2729_s29, 4  ;;  %p2655_p8 = scmp.ne.s32.totalorder %s2970_s0, %s2654_s7  ;;  %s18_s30 = int_to_ptr.vmem [resolvable:$true] %s17_s30 }
  0x15   :  { %p2658_p9 = scmp.lt.u32.totalorder %s2654_s7, %s2970_s0 }
  0x17   :  { %p2660_p10 = pnand %p2658_p9, %p2655_p8 }
  0x19   :  { %2663 = shalt.err (!%p2660_p10)
}
  0x1a   :  { %s2664_s12 = scalar_lea.vmem %s18_s30, 512  ;;  %p2669_p12 = scmp.lt.s32.totalorder %s18_s30, %s18_s30 }
  0x1b   :  { %p2665_p11 = scmp.ne.s32.totalorder %s18_s30, %s2664_s12  ;;  %p2670_p13 = scmp.lt.s32.totalorder %s2664_s12, %s2664_s12 }
  0x1d   :  { %p2671_p0 = por %p2670_p13, %p2669_p12 }
  0x1f   :  { %p2672_p1 = pnand %p2671_p0, %p2665_p11 }
  0x21   :  { %2675 = shalt.err (!%p2672_p1)
}
  0x22   :  { %s2730_s1 = smov 256   ;;  %s2731_s13 = smov 16  }
  0x23   :  { %23 = dma.hbm_to_vmem [thread:$0]  %s2970_s0, 512, %s18_s30, [#allocation5], %s2730_s1, %s2730_s1, %s2731_s13  }
  0x24   :  { %s2732_s16 = smov [#allocation9]   ;;  %s2676_s20 = scalar_lea.hbm %s2972_s2, 4096 }
  0x25   :  { %s41_s17 = sshll.u32 %s2732_s16, 4  ;;  %p2677_p2 = scmp.ne.s32.totalorder %s2972_s2, %s2676_s20  ;;  %s42_s17 = int_to_ptr.vmem [resolvable:$true] %s41_s17 }
  0x26   :  { %p2680_p3 = scmp.lt.u32.totalorder %s2676_s20, %s2972_s2 }
  0x28   :  { %p2682_p4 = pnand %p2680_p3, %p2677_p2 }
  0x2a   :  { %2685 = shalt.err (!%p2682_p4)
}
  0x2b   :  { %s2686_s25 = scalar_lea.vmem %s42_s17, 4096  ;;  %p2691_p6 = scmp.lt.s32.totalorder %s42_s17, %s42_s17 }
  0x2c   :  { %p2687_p5 = scmp.ne.s32.totalorder %s42_s17, %s2686_s25  ;;  %p2692_p7 = scmp.lt.s32.totalorder %s2686_s25, %s2686_s25 }
  0x2e   :  { %p2693_p8 = por %p2692_p7, %p2691_p6 }
  0x30   :  { %p2694_p9 = pnand %p2693_p8, %p2687_p5 }
  0x32   :  { %2697 = shalt.err (!%p2694_p9)
}
  0x33   :  { %s2733_s0 = smov 128   ;;  %s2734_s26 = smov 8  }
  0x34   :  { %47 = dma.hbm_to_vmem [thread:$0]  %s2972_s2, 4096, %s42_s17, [#allocation8], %s2733_s0, %s2733_s0, %s2734_s26  }
  0x35   :  { %2720 = dma.done.wait [#allocation5], 512  }
  0x36   :  { %2721 = vsyncadd [#allocation5], 4294966784 }
  0x37   :  { %2722 = dma.done.wait [#allocation8], 16384  }
  0x38   :  { %2723 = vsyncadd [#allocation8], 4294950912  ;;  %v2393_v0 = vld [vmem:[#allocation7 + $0xc] ss:$24 sps:$4 sm:$0xff]   ;;  %v2395_v1 = vld [vmem:[#allocation7 + $0x8] ss:$24 sps:$4 sm:$0xff]  }
  0x39   :  { %685 = vmatprep.subr.bf16.mxu1 %v2393_v0  ;;  %v2396_v2 = vld [vmem:[#allocation7 + $0x3c] ss:$24 sps:$4 sm:$0xff]   ;;  %v2400_v4 = vld [vmem:[#allocation7 + $0x38] ss:$24 sps:$4 sm:$0xff]   ;;  %v2402_v6 = vld [vmem:[#allocation7 + $0x6c] ss:$24 sps:$4 sm:$0xff]  }
  0x3a   :  { %686 = vmatpush1.bf16.msra.mxu1 %v2395_v1  ;;  %v2398_v3 = vld [vmem:[#allocation7 + $0x4] ss:$24 sps:$4 sm:$0xff]   ;;  %v2401_v5 = vld [vmem:[#allocation7] ss:$24 sps:$4 sm:$0xff]   ;;  %v2404_v7 = vld [vmem:[#allocation7 + $0x34] ss:$24 sps:$4 sm:$0xff]  }
  0x3b   :  { %687 = vmatprep.subr.bf16.mxu1 %v2396_v2  ;;  %642 = vmatprep.subr.bf16.mxu0 %v2398_v3  ;;  %v2407_v8 = vld [vmem:[#allocation7 + $0x30] ss:$24 sps:$4 sm:$0xff]   ;;  %v2408_v10 = vld [vmem:[#allocation7 + $0x9c] ss:$24 sps:$4 sm:$0xff]   ;;  %v2413_v12 = vld [vmem:[#allocation7 + $0x60] ss:$24 sps:$4 sm:$0xff]  }
  0x3c   :  { %643 = vmatpush1.bf16.msra.mxu0 %v2401_v5  ;;  %v2406_v9 = vld [vmem:[#allocation7 + $0x68] ss:$24 sps:$4 sm:$0xff]   ;;  %v2410_v11 = vld [vmem:[#allocation7 + $0x64] ss:$24 sps:$4 sm:$0xff]   ;;  %v2412_v13 = vld [vmem:[#allocation7 + $0x98] ss:$24 sps:$4 sm:$0xff]  }
  0x3d   :  { %644 = vmatprep.subr.bf16.mxu0 %v2404_v7  ;;  %v2416_v14 = vld [vmem:[#allocation7 + $0x94] ss:$24 sps:$4 sm:$0xff]   ;;  %v2418_v16 = vld [vmem:[#allocation7 + $0xc8] ss:$24 sps:$4 sm:$0xff]   ;;  %v2422_v18 = vld [vmem:[#allocation7 + $0xc4] ss:$24 sps:$4 sm:$0xff]  }
  0x3e   :  { %688 = vmatpush1.bf16.msra.mxu1 %v2400_v4  ;;  %v2414_v15 = vld [vmem:[#allocation7 + $0xcc] ss:$24 sps:$4 sm:$0xff]   ;;  %v2419_v17 = vld [vmem:[#allocation7 + $0x90] ss:$24 sps:$4 sm:$0xff]   ;;  %v2420_v19 = vld [vmem:[#allocation7 + $0xfc] ss:$24 sps:$4 sm:$0xff]  }
  0x3f   :  { %689 = vmatprep.subr.bf16.mxu1 %v2402_v6  ;;  %v2425_v20 = vld [vmem:[#allocation7 + $0xc0] ss:$24 sps:$4 sm:$0xff]   ;;  %v2428_v22 = vld [vmem:[#allocation7 + $0xf4] ss:$24 sps:$4 sm:$0xff]   ;;  %v2431_v25 = vld [vmem:[#allocation7 + $0xf0] ss:$24 sps:$4 sm:$0xff]  }
  0x40   :  { %645 = vmatpush1.bf16.msra.mxu0 %v2407_v8  ;;  %v2424_v21 = vld [vmem:[#allocation7 + $0xf8] ss:$24 sps:$4 sm:$0xff]   ;;  %v2426_v23 = vld [vmem:[#allocation7 + $0x12c] ss:$24 sps:$4 sm:$0xff]   ;;  %v2430_v24 = vld [vmem:[#allocation7 + $0x128] ss:$24 sps:$4 sm:$0xff]  }
  0x41   :  { %646 = vmatprep.subr.bf16.mxu0 %v2410_v11  ;;  %v2434_v26 = vld [vmem:[#allocation7 + $0x124] ss:$24 sps:$4 sm:$0xff]   ;;  %v2437_v28 = vld [vmem:[#allocation7 + $0x120] ss:$24 sps:$4 sm:$0xff]   ;;  %v2440_v30 = vld [vmem:[#allocation7 + $0x154] ss:$24 sps:$4 sm:$0xff]  }
  0x42   :  { %690 = vmatpush1.bf16.msra.mxu1 %v2406_v9  ;;  %v2432_v27 = vld [vmem:[#allocation7 + $0x15c] ss:$24 sps:$4 sm:$0xff]   ;;  %v2436_v29 = vld [vmem:[#allocation7 + $0x158] ss:$24 sps:$4 sm:$0xff]   ;;  %v2438_v31 = vld [vmem:[#allocation7 + $0x18c] ss:$24 sps:$4 sm:$0xff]  }
  0x43   :  { %691 = vmatprep.subr.bf16.mxu1 %v2408_v10  ;;  %v2442_v32 = vld [vmem:[#allocation7 + $0x188] ss:$24 sps:$4 sm:$0xff]   ;;  %v2446_v34 = vld [vmem:[#allocation7 + $0x184] ss:$24 sps:$4 sm:$0xff]   ;;  %v2448_v37 = vld [vmem:[#allocation7 + $0x1b8] ss:$24 sps:$4 sm:$0xff]  }
  0x44   :  { %647 = vmatpush1.bf16.msra.mxu0 %v2413_v12  ;;  %v2443_v33 = vld [vmem:[#allocation7 + $0x150] ss:$24 sps:$4 sm:$0xff]   ;;  %v2444_v35 = vld [vmem:[#allocation7 + $0x1bc] ss:$24 sps:$4 sm:$0xff]   ;;  %v2449_v36 = vld [vmem:[#allocation7 + $0x180] ss:$24 sps:$4 sm:$0xff]  }
  0x45   :  { %648 = vmatprep.subr.bf16.mxu0 %v2416_v14  ;;  %v2452_v38 = vld [vmem:[#allocation7 + $0x1b4] ss:$24 sps:$4 sm:$0xff]   ;;  %v2454_v40 = vld [vmem:[#allocation7 + $0x1e8] ss:$24 sps:$4 sm:$0xff]   ;;  %v2458_v42 = vld [vmem:[#allocation7 + $0x1e4] ss:$24 sps:$4 sm:$0xff]  }
  0x46   :  { %692 = vmatpush1.bf16.msra.mxu1 %v2412_v13  ;;  %v2450_v39 = vld [vmem:[#allocation7 + $0x1ec] ss:$24 sps:$4 sm:$0xff]   ;;  %v2455_v41 = vld [vmem:[#allocation7 + $0x1b0] ss:$24 sps:$4 sm:$0xff]   ;;  %v2456_v43 = vld [vmem:[#allocation7 + $0x21c] ss:$24 sps:$4 sm:$0xff]  }
  0x47   :  { %693 = vmatprep.subr.bf16.mxu1 %v2414_v15  ;;  %v61_v44 = vld [vmem:[#allocation4 + $0x8] sm:$0xff]  ;;  %v63_v45 = vld [vmem:[#allocation4 + $0x18] sm:$0xff]  ;;  %v60_v1 = vld [vmem:[#allocation4] sm:$0xff]  ;;  %v2735_v6 = vmov 0.0   ;;  %vm2736_vm0 = vmmov 0   ;;  %vm837_vm1 = vcmask 523264  }
  0x48   :  { %649 = vmatpush1.bf16.msra.mxu0 %v2419_v17  ;;  %v2460_v46 = vld [vmem:[#allocation7 + $0x218] ss:$24 sps:$4 sm:$0xff]   ;;  %v65_v48 = vpack.c.bf16 %v63_v45, %v61_v44  ;;  %v2462_v49 = vld [vmem:[#allocation7 + $0x24c] ss:$24 sps:$4 sm:$0xff]   ;;  %v2466_v52 = vld [vmem:[#allocation7 + $0x248] ss:$24 sps:$4 sm:$0xff]  }
  0x49   :  { %650 = vmatprep.subr.bf16.mxu0 %v2422_v18  ;;  %v2461_v47 = vld [vmem:[#allocation7 + $0x1e0] ss:$24 sps:$4 sm:$0xff]   ;;  %v2464_v50 = vld [vmem:[#allocation7 + $0x214] ss:$24 sps:$4 sm:$0xff]   ;;  %v2467_v51 = vld [vmem:[#allocation7 + $0x210] ss:$24 sps:$4 sm:$0xff]  }
  0x4a   :  { %694 = vmatpush1.bf16.msra.mxu1 %v2418_v16  ;;  %717 = vmatprep.mubr.bf16.mxu1 %v65_v48  ;;  %v2470_v53 = vld [vmem:[#allocation7 + $0x244] ss:$24 sps:$4 sm:$0xff]   ;;  %v2473_v55 = vld [vmem:[#allocation7 + $0x240] ss:$24 sps:$4 sm:$0xff]   ;;  %v2476_v57 = vld [vmem:[#allocation7 + $0x274] ss:$24 sps:$4 sm:$0xff]  }
  0x4b   :  { %695 = vmatprep.subr.bf16.mxu1 %v2420_v19  ;;  %674 = vmatprep.mubr.bf16.mxu0 %v65_v48  ;;  %v2468_v54 = vld [vmem:[#allocation7 + $0x27c] ss:$24 sps:$4 sm:$0xff]   ;;  %v2472_v56 = vld [vmem:[#allocation7 + $0x278] ss:$24 sps:$4 sm:$0xff]   ;;  %v2474_v58 = vld [vmem:[#allocation7 + $0x2ac] ss:$24 sps:$4 sm:$0xff]  }
  0x4c   :  { %651 = vmatpush1.bf16.msra.mxu0 %v2425_v20  ;;  %v2479_v59 = vld [vmem:[#allocation7 + $0x270] ss:$24 sps:$4 sm:$0xff]   ;;  %v2482_v61 = vld [vmem:[#allocation7 + $0x2a4] ss:$24 sps:$4 sm:$0xff]   ;;  %v2485_v63 = vld [vmem:[#allocation7 + $0x2a0] ss:$24 sps:$4 sm:$0xff]  }
  0x4d   :  { %652 = vmatprep.subr.bf16.mxu0 %v2428_v22  ;;  %v2478_v60 = vld [vmem:[#allocation7 + $0x2a8] ss:$24 sps:$4 sm:$0xff]   ;;  %v2480_v62 = vld [vmem:[#allocation7 + $0x2dc] ss:$24 sps:$4 sm:$0xff]   ;;  %v2484_v0 = vld [vmem:[#allocation7 + $0x2d8] ss:$24 sps:$4 sm:$0xff]  }
  0x4e   :  { %696 = vmatpush1.bf16.msra.mxu1 %v2424_v21  ;;  %v62_v2 = vld [vmem:[#allocation4 + $0x10] sm:$0xff]  ;;  %v2517_v44 = vld [vmem:[#allocation7 + $0x1c0] ss:$24 sps:$4 sm:$0xff]   ;;  %vm930_vm3 = vcmask 64512   ;;  %s2738_s2 = smov 64   ;;  %vm958_vm4 = vcmask 1043456  }
  0x4f   :  { %697 = vmatprep.subr.bf16.mxu1 %v2426_v23  ;;  %v2486_v3 = vld [vmem:[#allocation7 + $0x2d4] ss:$24 sps:$4 sm:$0xff]   ;;  %v2488_v4 = vld [vmem:[#allocation7 + $0x2d0] ss:$24 sps:$4 sm:$0xff]   ;;  %v2804_v5 = vpack.c.bf16 %v62_v2, %v60_v1  ;;  %vm1050_vm5 = vcmask 519168   ;;  %vm1311_vm6 = vcmask 1043968  }
  0x50   :  { %653 = vmatpush1.bf16.msra.mxu0 %v2431_v25  ;;  %v2489_v25 = vld [vmem:[#allocation7 + $0x10] ss:$24 sps:$4 sm:$0xff]   ;;  %v2522_v45 = vld [vmem:[#allocation7 + $0x1f4] ss:$24 sps:$4 sm:$0xff]   ;;  %s2739_s5 = smov [#allocation10]  }
  0x51   :  { %654 = vmatprep.subr.bf16.mxu0 %v2434_v26  ;;  %v2491_v26 = vld [vmem:[#allocation7 + $0x14] ss:$24 sps:$4 sm:$0xff]   ;;  %s2060_s6 = sshll.u32 %s2739_s5, 4  ;;  %s2061_s6 = int_to_ptr.vmem [resolvable:$true] %s2060_s6 }
  0x52   :  { %698 = vmatpush1.bf16.msra.mxu1 %v2430_v24  ;;  %p2703_p11 = scmp.lt.s32.totalorder %s2061_s6, %s2061_s6 }
  0x53   :  { %699 = vmatprep.subr.bf16.mxu1 %v2432_v27  ;;  %v2494_v27 = vld [vmem:[#allocation7 + $0x44] ss:$24 sps:$4 sm:$0xff]  }
  0x54   :  { %655 = vmatpush1.bf16.msra.mxu0 %v2437_v28  ;;  %v2492_v28 = vld [vmem:[#allocation7 + $0x40] ss:$24 sps:$4 sm:$0xff]  }
  0x55   :  { %656 = vmatprep.subr.bf16.mxu0 %v2440_v30  ;;  %v2495_v30 = vld [vmem:[#allocation7 + $0x70] ss:$24 sps:$4 sm:$0xff]  }
  0x56   :  { %700 = vmatpush1.bf16.msra.mxu1 %v2436_v29  ;;  %v2497_v29 = vld [vmem:[#allocation7 + $0x74] ss:$24 sps:$4 sm:$0xff]  }
  0x57   :  { %701 = vmatprep.subr.bf16.mxu1 %v2438_v31  ;;  %v2499_v31 = vld [vmem:[#allocation7 + $0xa0] ss:$24 sps:$4 sm:$0xff]  }
  0x58   :  { %657 = vmatpush1.bf16.msra.mxu0 %v2443_v33  ;;  %v2504_v33 = vld [vmem:[#allocation7 + $0xd4] ss:$24 sps:$4 sm:$0xff]  }
  0x59   :  { %658 = vmatprep.subr.bf16.mxu0 %v2446_v34  ;;  %v2502_v34 = vld [vmem:[#allocation7 + $0xd0] ss:$24 sps:$4 sm:$0xff]  }
  0x5a   :  { %702 = vmatpush1.bf16.msra.mxu1 %v2442_v32  ;;  %v2501_v32 = vld [vmem:[#allocation7 + $0xa4] ss:$24 sps:$4 sm:$0xff]  }
  0x5b   :  { %703 = vmatprep.subr.bf16.mxu1 %v2444_v35  ;;  %v2507_v35 = vld [vmem:[#allocation7 + $0x104] ss:$24 sps:$4 sm:$0xff]  }
  0x5c   :  { %659 = vmatpush1.bf16.msra.mxu0 %v2449_v36  ;;  %v2505_v36 = vld [vmem:[#allocation7 + $0x100] ss:$24 sps:$4 sm:$0xff]  }
  0x5d   :  { %660 = vmatprep.subr.bf16.mxu0 %v2452_v38  ;;  %v2508_v38 = vld [vmem:[#allocation7 + $0x130] ss:$24 sps:$4 sm:$0xff]  }
  0x5e   :  { %704 = vmatpush1.bf16.msra.mxu1 %v2448_v37  ;;  %v2510_v37 = vld [vmem:[#allocation7 + $0x134] ss:$24 sps:$4 sm:$0xff]  }
  0x5f   :  { %705 = vmatprep.subr.bf16.mxu1 %v2450_v39  ;;  %v2513_v39 = vld [vmem:[#allocation7 + $0x164] ss:$24 sps:$4 sm:$0xff]  }
  0x60   :  { %661 = vmatpush1.bf16.msra.mxu0 %v2455_v41  ;;  %v2516_v41 = vld [vmem:[#allocation7 + $0x194] ss:$24 sps:$4 sm:$0xff]  }
  0x61   :  { %662 = vmatprep.subr.bf16.mxu0 %v2458_v42  ;;  %v2514_v42 = vld [vmem:[#allocation7 + $0x190] ss:$24 sps:$4 sm:$0xff]  }
  0x62   :  { %706 = vmatpush1.bf16.msra.mxu1 %v2454_v40  ;;  %v2511_v40 = vld [vmem:[#allocation7 + $0x160] ss:$24 sps:$4 sm:$0xff]  }
  0x63   :  { %707 = vmatprep.subr.bf16.mxu1 %v2456_v43  ;;  %v2519_v43 = vld [vmem:[#allocation7 + $0x1c4] ss:$24 sps:$4 sm:$0xff]  }
  0x64   :  { %663 = vmatpush1.bf16.msra.mxu0 %v2461_v47  ;;  %v2525_v47 = vld [vmem:[#allocation7 + $0x224] ss:$24 sps:$4 sm:$0xff]  }
  0x65   :  { %664 = vmatprep.subr.bf16.mxu0 %v2464_v50  ;;  %v2526_v50 = vld [vmem:[#allocation7 + $0x250] ss:$24 sps:$4 sm:$0xff]  }
  0x66   :  { %708 = vmatpush1.bf16.msra.mxu1 %v2460_v46  ;;  %v2520_v46 = vld [vmem:[#allocation7 + $0x1f0] ss:$24 sps:$4 sm:$0xff]  }
  0x67   :  { %709 = vmatprep.subr.bf16.mxu1 %v2462_v49  ;;  %v2528_v49 = vld [vmem:[#allocation7 + $0x254] ss:$24 sps:$4 sm:$0xff]  }
  0x68   :  { %665 = vmatpush1.bf16.msra.mxu0 %v2467_v51  ;;  %v2531_v51 = vld [vmem:[#allocation7 + $0x284] ss:$24 sps:$4 sm:$0xff]  }
  0x69   :  { %666 = vmatprep.subr.bf16.mxu0 %v2470_v53  ;;  %v2534_v53 = vld [vmem:[#allocation7 + $0x2b4] ss:$24 sps:$4 sm:$0xff]  }
  0x6a   :  { %710 = vmatpush1.bf16.msra.mxu1 %v2466_v52  ;;  %v2529_v52 = vld [vmem:[#allocation7 + $0x280] ss:$24 sps:$4 sm:$0xff]  }
  0x6b   :  { %711 = vmatprep.subr.bf16.mxu1 %v2468_v54  ;;  %v2532_v54 = vld [vmem:[#allocation7 + $0x2b0] ss:$24 sps:$4 sm:$0xff]  }
  0x6c   :  { %667 = vmatpush1.bf16.msra.mxu0 %v2473_v55  ;;  %v2537_v55 = vld [vmem:[#allocation7 + $0x2e4] ss:$24 sps:$4 sm:$0xff]  }
  0x6d   :  { %668 = vmatprep.subr.bf16.mxu0 %v2476_v57  ;;  %v825_v57 = vlaneseq }
  0x6e   :  { %712 = vmatpush1.bf16.msra.mxu1 %v2472_v56  ;;  %v2535_v56 = vld [vmem:[#allocation7 + $0x2e0] ss:$24 sps:$4 sm:$0xff]  }
  0x6f   :  { %713 = vmatprep.subr.bf16.mxu1 %v2474_v58  ;;  %v2822_v58 = vshrl.u32 %v825_v57, 7 }
  0x70   :  { %669 = vmatpush1.bf16.msra.mxu0 %v2479_v59  ;;  %v828_v59 = vand.u32 127, %v825_v57 }
  0x71   :  { %670 = vmatprep.subr.bf16.mxu0 %v2482_v61 }
  0x72   :  { %714 = vmatpush1.bf16.msra.mxu1 %v2478_v60  ;;  %vm829_vm2 = vcmp.ge.s32.totalorder %v2822_v58, %v828_v59  ;;  %v2737_v60 = vmov -1e+30  }
  0x73   :  { %715 = vmatprep.subr.bf16.mxu1 %v2480_v62  ;;  %v2825_v61 = vsel %vm829_vm2, 0.0, %v2737_v60 }
  0x74   :  { %671 = vmatpush1.bf16.msra.mxu0 %v2485_v63 }
  0x75   :  { %672 = vmatprep.subr.bf16.mxu0 %v2486_v3 }
  0x76   :  { %716 = vmatpush1.bf16.msra.mxu1 %v2484_v0 }
  0x77   :  { %2283 = vmatprep.subr.bf16.mxu1 %v2735_v6 }
  0x78   :  { %673 = vmatpush1.bf16.msra.mxu0 %v2488_v4 }
  0x79   :  { %718 = vmatmul.mubr.bf16.vlgmr.msra.gmra.mrb[0].mxu1 %v2804_v5  ;;  %728 = vmatprep.subr.bf16.mxu0 %v2491_v26 }
  0x7a   :  { %2285 = vmatprep.mubr.msk.bf16.mxu1 %vm2736_vm0, %v2735_v6 }
  0x7b   :  { %675 = vmatmul.mubr.bf16.vlgmr.msra.gmra.mrb[0].mxu0 %v2804_v5 }
  0x7c   :  { %760 = vmatprep.mubr.bf16.mxu0 %v65_v48  ;;  %729 = vmatpush1.bf16.msra.mxu0 %v2489_v25  ;;  %v2523_v48 = vld [vmem:[#allocation7 + $0x220] ss:$24 sps:$4 sm:$0xff]  }
  0x7d   :  { %730 = vmatprep.subr.bf16.mxu0 %v2494_v27 }
  0x80   :  { %731 = vmatpush1.bf16.msra.mxu0 %v2492_v28 }
  0x81   :  { %732 = vmatprep.subr.bf16.mxu0 %v2497_v29 }
  0x84   :  { %733 = vmatpush1.bf16.msra.mxu0 %v2495_v30 }
  0x85   :  { %734 = vmatprep.subr.bf16.mxu0 %v2501_v32 }
  0x88   :  { %735 = vmatpush1.bf16.msra.mxu0 %v2499_v31 }
  0x89   :  { %736 = vmatprep.subr.bf16.mxu0 %v2504_v33 }
  0x8c   :  { %737 = vmatpush1.bf16.msra.mxu0 %v2502_v34 }
  0x8d   :  { %738 = vmatprep.subr.bf16.mxu0 %v2507_v35 }
  0x90   :  { %739 = vmatpush1.bf16.msra.mxu0 %v2505_v36 }
  0x91   :  { %740 = vmatprep.subr.bf16.mxu0 %v2510_v37 }
  0x94   :  { %741 = vmatpush1.bf16.msra.mxu0 %v2508_v38 }
  0x95   :  { %742 = vmatprep.subr.bf16.mxu0 %v2513_v39 }
  0x98   :  { %743 = vmatpush1.bf16.msra.mxu0 %v2511_v40 }
  0x99   :  { %744 = vmatprep.subr.bf16.mxu0 %v2516_v41 }
  0x9c   :  { %745 = vmatpush1.bf16.msra.mxu0 %v2514_v42 }
  0x9d   :  { %746 = vmatprep.subr.bf16.mxu0 %v2519_v43 }
  0xa0   :  { %747 = vmatpush1.bf16.msra.mxu0 %v2517_v44 }
  0xa1   :  { %748 = vmatprep.subr.bf16.mxu0 %v2522_v45 }
  0xa4   :  { %749 = vmatpush1.bf16.msra.mxu0 %v2520_v46 }
  0xa5   :  { %750 = vmatprep.subr.bf16.mxu0 %v2525_v47 }
  0xa8   :  { %751 = vmatpush1.bf16.msra.mxu0 %v2523_v48 }
  0xa9   :  { %752 = vmatprep.subr.bf16.mxu0 %v2528_v49 }
  0xac   :  { %753 = vmatpush1.bf16.msra.mxu0 %v2526_v50 }
  0xad   :  { %754 = vmatprep.subr.bf16.mxu0 %v2531_v51 }
  0xb0   :  { %755 = vmatpush1.bf16.msra.mxu0 %v2529_v52 }
  0xb1   :  { %756 = vmatprep.subr.bf16.mxu0 %v2534_v53 }
  0xb4   :  { %757 = vmatpush1.bf16.msra.mxu0 %v2532_v54 }
  0xb5   :  { %758 = vmatprep.subr.bf16.mxu0 %v2537_v55 }
  0xb8   :  { %759 = vmatpush1.bf16.msra.mxu0 %v2535_v56 }
  0xbb   :  { %761 = vmatmul.mubr.bf16.vlgmr.msra.gmra.mrb[4].mxu0 %v2804_v5 }
 0x14c   :  { %v719_v7 = vpop.f32.mrb[0].mxu1 }
 0x14d   :  { %v721_v8 = vpop.f32.mrb[1].mxu1 }
 0x14e   :  { %v2242_v9 = vpack.c.bf16 %v721_v8, %v719_v7  ;;  %v723_v10 = vpop.f32.mrb[2].mxu1  ;;  %v676_v12 = vpop.f32.mrb[0].mxu0 }
 0x14f   :  { %v725_v11 = vpop.f32.mrb[3].mxu1  ;;  %v678_v14 = vpop.f32.mrb[1].mxu0 }
 0x150   :  { %820 = vst [vmem:[#allocation2 + $0x8] sm:$0xff] %v2242_v9  ;;  %v2245_v13 = vpack.c.bf16 %v725_v11, %v723_v10  ;;  %v2241_v15 = vpack.c.bf16 %v678_v14, %v676_v12  ;;  %v680_v16 = vpop.f32.mrb[2].mxu0 }
 0x151   :  { %v682_v17 = vpop.f32.mrb[3].mxu0 }
 0x152   :  { %823 = vst [vmem:[#allocation2 + $0x20] sm:$0xff] %v2245_v13  ;;  %819 = vst [vmem:[#allocation2] sm:$0xff] %v2241_v15  ;;  %v2244_v18 = vpack.c.bf16 %v682_v17, %v680_v16 }
 0x154   :  { %822 = vst [vmem:[#allocation2 + $0x18] sm:$0xff] %v2244_v18 }
 0x157   :  { %v833_v19 = vld [vmem:[#allocation2 + $0x8] sm:$0xf] }
 0x158   :  { %v842_v20 = vsel %vm837_vm1, %v833_v19, 0  ;;  %v2498_v11 = vld [vmem:[#allocation2 + $0x8] ss:$0 sps:$4 sm:$0xff]  }
 0x159   :  { %2284 = vmatpush3.bf16.xpose.msra.mxu1 %v842_v20  ;;  %v831_v21 = vld [vmem:[#allocation2] sm:$0xf] }
 0x15a   :  { %2289 = vmatprep.subr.bf16.mxu1 %v2735_v6  ;;  %v834_v22 = vld [vmem:[#allocation2 + $0x20] sm:$0xf] }
 0x15b   :  { %v888_v23 = vsel %vm837_vm1, %v834_v22, 0  ;;  %v832_v24 = vld [vmem:[#allocation2 + $0x18] sm:$0xf]  ;;  %v2538_v29 = vld [vmem:[#allocation2] ss:$0 sps:$4 sm:$0xff]  }
 0x15c   :  { %v2539_v31 = vld [vmem:[#allocation2 + $0x20] ss:$0 sps:$4 sm:$0xff]   ;;  %v2540_v32 = vld [vmem:[#allocation2 + $0x18] ss:$0 sps:$4 sm:$0xff]  }
 0x160   :  { %2286 = vmatmul.mubr.msk.bf16.vlgmr.msra.gmra.mrb[4].mxu1 %vm837_vm1, %v831_v21 }
 0x161   :  { %2290 = vmatpush3.bf16.xpose.msra.mxu1 %v888_v23  ;;  %2291 = vmatprep.mubr.msk.bf16.mxu1 %vm2736_vm0, %v2735_v6 }
 0x162   :  { %2295 = vmatprep.subr.bf16.mxu1 %v2735_v6 }
 0x168   :  { %2292 = vmatmul.mubr.msk.bf16.vlgmr.msra.gmra.mrb[8].mxu1 %vm837_vm1, %v832_v24 }
 0x169   :  { %2297 = vmatprep.mubr.msk.bf16.mxu1 %vm2736_vm0, %v2735_v6 }
 0x18e   :  { %v762_v22 = vpop.f32.mrb[4].mxu0 }
 0x18f   :  { %v764_v23 = vpop.f32.mrb[5].mxu0 }
 0x190   :  { %v2243_v24 = vpack.c.bf16 %v764_v23, %v762_v22  ;;  %v766_v25 = vpop.f32.mrb[6].mxu0 }
 0x191   :  { %v768_v26 = vpop.f32.mrb[7].mxu0 }
 0x192   :  { %821 = vst [vmem:[#allocation2 + $0x10] sm:$0xff] %v2243_v24  ;;  %v2246_v27 = vpack.c.bf16 %v768_v26, %v766_v25 }
 0x194   :  { %824 = vst [vmem:[#allocation2 + $0x28] sm:$0xff] %v2246_v27 }
 0x199   :  { %v835_v28 = vld [vmem:[#allocation2 + $0x10] sm:$0xf] }
 0x19a   :  { %v960_v30 = vsel %vm958_vm4, %v835_v28, 0 }
 0x19b   :  { %2296 = vmatpush3.bf16.msra.mxu1 %v960_v30  ;;  %v836_v37 = vld [vmem:[#allocation2 + $0x28] sm:$0xf] }
 0x19c   :  { %2301 = vmatprep.subr.bf16.mxu1 %v2735_v6  ;;  %v1006_v39 = vsel %vm958_vm4, %v836_v37, 0  ;;  %v1314_v37 = vld [vmem:[#allocation2 + $0x4] sm:$0xf] }
 0x233   :  { %v878_v62 = vpop.f32.mrb[4].mxu1 }
 0x234   :  { %v879_v63 = vadd.f32 %v878_v62, %v2825_v61  ;;  %v2287_v0 = vpop.f32.mrb[5].mxu1 }
 0x235   :  { %v881_v1 = vpop.f32.mrb[6].mxu1 }
 0x236   :  { %v2288_v2 = vpop.f32.mrb[7].mxu1  ;;  %v931_v3 = vsel %vm930_vm3, %v879_v63, -inf }
 0x237   :  { %932 = vmax.xlane.f32.xlu0 %v931_v3 }
 0x23b   :  { %v924_v4 = vpop.f32.mrb[8].mxu1 }
 0x23c   :  { %v925_v5 = vadd.f32 %v924_v4, %v2825_v61  ;;  %v2293_v7 = vpop.f32.mrb[9].mxu1 }
 0x23d   :  { %v927_v8 = vpop.f32.mrb[10].mxu1 }
 0x23e   :  { %v2294_v9 = vpop.f32.mrb[11].mxu1  ;;  %v934_v10 = vsel %vm930_vm3, %v925_v5, -inf }
 0x23f   :  { %935 = vmax.xlane.f32.xlu0 %v934_v10  ;;  %v2541_v10 = vld [vmem:[#allocation2 + $0x28] ss:$0 sps:$4 sm:$0xff]  }
 0x255   :  { %1067 = vrot.lane.b32.xlu0 %v2498_v11, %s2738_s2 }
 0x2c4   :  { %v933_v12 = vpop.xlane.xlu0 %932 }
 0x2c5   :  { %v937_v13 = vsub.f32 %v879_v63, %v933_v12 }
 0x2c7   :  { %v939_v14 = vmul.f32 1.442695, %v937_v13 }
 0x2c9   :  { %2600 = vpow2.f32 %v939_v14 }
 0x2cc   :  { %v936_v15 = vpop.xlane.xlu0 %935 }
 0x2cd   :  { %v938_v16 = vsub.f32 %v925_v5, %v936_v15 }
 0x2cf   :  { %v941_v17 = vmul.f32 1.442695, %v938_v16 }
 0x2d0   :  { %v1068_v42 = vpop.permute.xlu0 %1067 }
 0x2d1   :  { %2602 = vpow2.f32 %v941_v17  ;;  %v1073_v45 = vsel %vm837_vm1, %v1068_v42, 0 }
 0x2d3   :  { %v2601_v18 = vpop.eup %2600 }
 0x2d4   :  { %v943_v19 = vsel %vm930_vm3, %v2601_v18, 0.0 }
 0x2d5   :  { %944 = vadd.xlane.f32.xlu1 %v943_v19 }
 0x2db   :  { %v2603_v20 = vpop.eup %2602 }
 0x2dc   :  { %v946_v21 = vsel %vm930_vm3, %v2603_v20, 0.0 }
 0x2dd   :  { %947 = vadd.xlane.f32.xlu1 %v946_v21  ;;  %v2542_v21 = vld [vmem:[#allocation2 + $0x10] ss:$0 sps:$4 sm:$0xff]  }
 0x2ee   :  { %1062 = vrot.lane.b32.xlu1 %v2538_v29, %s2738_s2 }
 0x2f2   :  { %1123 = vrot.lane.b32.xlu1 %v2539_v31, %s2738_s2 }
 0x2f6   :  { %1118 = vrot.lane.b32.xlu1 %v2540_v32, %s2738_s2 }
 0x362   :  { %v945_v33 = vpop.xlane.xlu1 %944 }
 0x363   :  { %2604 = vrcp.f32 %v945_v33 }
 0x36a   :  { %v948_v34 = vpop.xlane.xlu1 %947 }
 0x36b   :  { %2606 = vrcp.f32 %v948_v34  ;;  %v1316_v34 = vld [vmem:[#allocation2 + $0xc] sm:$0xf] }
 0x36d   :  { %v2605_v35 = vpop.eup %2604 }
 0x36e   :  { %v951_v36 = vmul.f32 %v2605_v35, %v2601_v18  ;;  %v1063_v44 = vpop.permute.xlu1 %1062  ;;  %v1324_v35 = vsel %vm837_vm1, %v1316_v34, 0 }
 0x370   :  { %v953_v38 = vpack.c.bf16 %v951_v36, %v951_v36  ;;  %v1317_v36 = vld [vmem:[#allocation2 + $0x24] sm:$0xf] }
 0x372   :  { %2298 = vmatmul.mubr.msk.bf16.vlgmr.msra.gmra.mrb[12].mxu1 %vm930_vm3, %v953_v38  ;;  %v1124_v46 = vpop.permute.xlu1 %1123  ;;  %v1370_v38 = vsel %vm837_vm1, %v1317_v36, 0 }
 0x373   :  { %2302 = vmatpush3.bf16.msra.mxu1 %v1006_v39  ;;  %2303 = vmatprep.mubr.msk.bf16.mxu1 %vm2736_vm0, %v2735_v6  ;;  %v1129_v47 = vsel %vm837_vm1, %v1124_v46, 0  ;;  %v1318_v39 = vld [vmem:[#allocation2 + $0x14] sm:$0xf] }
 0x374   :  { %2307 = vmatprep.subr.bf16.mxu1 %v2735_v6 }
 0x375   :  { %v2607_v40 = vpop.eup %2606 }
 0x376   :  { %v952_v41 = vmul.f32 %v2607_v40, %v2603_v20  ;;  %v1119_v48 = vpop.permute.xlu1 %1118  ;;  %v1315_v40 = vld [vmem:[#allocation2 + $0x1c] sm:$0xf] }
 0x378   :  { %v954_v43 = vpack.c.bf16 %v952_v41, %v952_v41  ;;  %v1440_v41 = vsel %vm958_vm4, %v1318_v39, 0 }
 0x37a   :  { %2304 = vmatmul.mubr.msk.bf16.vlgmr.msra.gmra.mrb[16].mxu1 %vm930_vm3, %v954_v43 }
 0x37b   :  { %2309 = vmatprep.mubr.msk.bf16.mxu1 %vm2736_vm0, %v2735_v6 }
 0x37c   :  { %2308 = vmatpush3.bf16.xpose.msra.mxu1 %v1073_v45 }
 0x37d   :  { %2313 = vmatprep.subr.bf16.mxu1 %v2735_v6 }
 0x383   :  { %2310 = vmatmul.mubr.msk.bf16.vlgmr.msra.gmra.mrb[20].mxu1 %vm837_vm1, %v1063_v44 }
 0x384   :  { %2314 = vmatpush3.bf16.xpose.msra.mxu1 %v1129_v47  ;;  %2315 = vmatprep.mubr.msk.bf16.mxu1 %vm2736_vm0, %v2735_v6 }
 0x385   :  { %2319 = vmatprep.subr.bf16.mxu1 %v2735_v6 }
 0x38b   :  { %2316 = vmatmul.mubr.msk.bf16.vlgmr.msra.gmra.mrb[24].mxu1 %vm837_vm1, %v1119_v48 }
 0x38c   :  { %2321 = vmatprep.mubr.msk.bf16.mxu1 %vm2736_vm0, %v2735_v6 }
 0x445   :  { %v996_v49 = vpop.f32.mrb[12].mxu1 }
 0x446   :  { %v1048_v50 = vpack.c.bf16 %v996_v49, %v996_v49  ;;  %v2299_v51 = vpop.f32.mrb[13].mxu1 }
 0x447   :  { %v999_v52 = vpop.f32.mrb[14].mxu1 }
 0x448   :  { %1051 = vst.msk [vmem:[#allocation3] sm:$0xf] %vm1050_vm5, %v1048_v50  ;;  %v2300_v53 = vpop.f32.mrb[15].mxu1 }
 0x44d   :  { %v1042_v54 = vpop.f32.mrb[16].mxu1 }
 0x44e   :  { %v1049_v55 = vpack.c.bf16 %v1042_v54, %v1042_v54  ;;  %v2305_v56 = vpop.f32.mrb[17].mxu1 }
 0x44f   :  { %v1045_v57 = vpop.f32.mrb[18].mxu1 }
 0x450   :  { %1052 = vst.msk [vmem:[#allocation3 + $0x8] sm:$0xf] %vm1050_vm5, %v1049_v55  ;;  %v2306_v59 = vpop.f32.mrb[19].mxu1 }
 0x456   :  { %v1109_v60 = vpop.f32.mrb[20].mxu1 }
 0x457   :  { %v1110_v62 = vadd.f32 %v1109_v60, %v2825_v61  ;;  %v2311_v63 = vpop.f32.mrb[21].mxu1 }
 0x458   :  { %v1112_v0 = vpop.f32.mrb[22].mxu1 }
 0x459   :  { %v2312_v1 = vpop.f32.mrb[23].mxu1  ;;  %v1171_v2 = vsel %vm930_vm3, %v1110_v62, -inf }
 0x45a   :  { %1172 = vmax.xlane.f32.xlu0 %v1171_v2 }
 0x45e   :  { %v1165_v3 = vpop.f32.mrb[24].mxu1 }
 0x45f   :  { %v1166_v4 = vadd.f32 %v1165_v3, %v2825_v61  ;;  %v2317_v5 = vpop.f32.mrb[25].mxu1 }
 0x460   :  { %v1168_v7 = vpop.f32.mrb[26].mxu1 }
 0x461   :  { %v2318_v8 = vpop.f32.mrb[27].mxu1  ;;  %v1174_v9 = vsel %vm930_vm3, %v1166_v4, -inf }
 0x462   :  { %1175 = vmax.xlane.f32.xlu1 %v1174_v9 }
 0x473   :  { %1249 = vrot.lane.b32.xlu1 %v2541_v10, %s2738_s2 }
 0x4e7   :  { %v1173_v11 = vpop.xlane.xlu0 %1172 }
 0x4e8   :  { %v1177_v12 = vsub.f32 %v1110_v62, %v1173_v11  ;;  %v2543_v11 = vld [vmem:[#allocation2 + $0xc] ss:$0 sps:$4 sm:$0xff]  }
 0x4ea   :  { %v1179_v13 = vmul.f32 1.442695, %v1177_v12  ;;  %v2544_v12 = vld [vmem:[#allocation2 + $0x4] ss:$0 sps:$4 sm:$0xff]  }
 0x4ec   :  { %2608 = vpow2.f32 %v1179_v13  ;;  %v2545_v13 = vld [vmem:[#allocation2 + $0x24] ss:$0 sps:$4 sm:$0xff]  }
 0x4ef   :  { %v1176_v14 = vpop.xlane.xlu1 %1175 }
 0x4f0   :  { %v1178_v15 = vsub.f32 %v1166_v4, %v1176_v14  ;;  %v2546_v14 = vld [vmem:[#allocation2 + $0x1c] ss:$0 sps:$4 sm:$0xff]  }
 0x4f2   :  { %v1181_v16 = vmul.f32 1.442695, %v1178_v15 }
 0x4f3   :  { %v1250_v28 = vpop.permute.xlu1 %1249 }
 0x4f4   :  { %2610 = vpow2.f32 %v1181_v16  ;;  %v1255_v30 = vsel %vm958_vm4, %v1250_v28, 0 }
 0x4f6   :  { %v2609_v17 = vpop.eup %2608 }
 0x4f7   :  { %v1183_v18 = vsel %vm930_vm3, %v2609_v17, 0.0 }
 0x4f8   :  { %1184 = vadd.xlane.f32.xlu0 %v1183_v18 }
 0x4fe   :  { %v2611_v19 = vpop.eup %2610 }
 0x4ff   :  { %v1186_v20 = vsel %vm930_vm3, %v2611_v19, 0.0 }
 0x500   :  { %1187 = vadd.xlane.f32.xlu0 %v1186_v20 }
 0x516   :  { %1198 = vrot.lane.b32.xlu0 %v2542_v21, %s2738_s2 }
 0x585   :  { %v1185_v22 = vpop.xlane.xlu0 %1184 }
 0x586   :  { %2612 = vrcp.f32 %v1185_v22 }
 0x58d   :  { %v1188_v23 = vpop.xlane.xlu0 %1187 }
 0x58e   :  { %2614 = vrcp.f32 %v1188_v23 }
 0x590   :  { %v2613_v24 = vpop.eup %2612 }
 0x591   :  { %v1191_v25 = vmul.f32 %v2613_v24, %v2609_v17  ;;  %v1199_v26 = vpop.permute.xlu0 %1198 }
 0x592   :  { %v1204_v27 = vsel %vm958_vm4, %v1199_v26, 0 }
 0x593   :  { %2320 = vmatpush3.bf16.msra.mxu1 %v1204_v27  ;;  %v1193_v29 = vpack.c.bf16 %v1191_v25, %v1191_v25 }
 0x594   :  { %2325 = vmatprep.subr.bf16.mxu1 %v2735_v6 }
 0x596   :  { %2322 = vmatmul.mubr.msk.bf16.vlgmr.msra.gmra.mrb[28].mxu1 %vm930_vm3, %v1193_v29 }
 0x597   :  { %2326 = vmatpush3.bf16.msra.mxu1 %v1255_v30  ;;  %2327 = vmatprep.mubr.msk.bf16.mxu1 %vm2736_vm0, %v2735_v6 }
 0x598   :  { %v2615_v31 = vpop.eup %2614  ;;  %2331 = vmatprep.subr.bf16.mxu1 %v2735_v6 }
 0x599   :  { %v1192_v32 = vmul.f32 %v2615_v31, %v2611_v19  ;;  %v1319_v19 = vld [vmem:[#allocation2 + $0x2c] sm:$0xf] }
 0x59a   :  { %v1486_v21 = vsel %vm958_vm4, %v1319_v19, 0  ;;  %v2549_v19 = vld [vmem:[#allocation9] ss:$8 sps:$4 sm:$0xff]  }
 0x59b   :  { %v1194_v33 = vpack.c.bf16 %v1192_v32, %v1192_v32 }
 0x59e   :  { %2328 = vmatmul.mubr.msk.bf16.vlgmr.msra.gmra.mrb[32].mxu1 %vm930_vm3, %v1194_v33 }
 0x59f   :  { %2333 = vmatprep.mubr.msk.bf16.mxu1 %vm2736_vm0, %v2735_v6 }
 0x5a0   :  { %2332 = vmatpush3.bf16.xpose.msra.mxu1 %v1324_v35 }
 0x5a1   :  { %2337 = vmatprep.subr.bf16.mxu1 %v2735_v6 }
 0x5a7   :  { %2334 = vmatmul.mubr.msk.bf16.vlgmr.msra.gmra.mrb[36].mxu1 %vm837_vm1, %v1314_v37 }
 0x5a8   :  { %2338 = vmatpush3.bf16.xpose.msra.mxu1 %v1370_v38  ;;  %2339 = vmatprep.mubr.msk.bf16.mxu1 %vm2736_vm0, %v2735_v6 }
 0x5a9   :  { %2343 = vmatprep.subr.bf16.mxu1 %v2735_v6 }
 0x5af   :  { %2340 = vmatmul.mubr.msk.bf16.vlgmr.msra.gmra.mrb[40].mxu1 %vm837_vm1, %v1315_v40 }
 0x5b0   :  { %2344 = vmatpush3.bf16.msra.mxu1 %v1440_v41  ;;  %2345 = vmatprep.mubr.msk.bf16.mxu1 %vm2736_vm0, %v2735_v6 }
 0x5b1   :  { %2349 = vmatprep.subr.bf16.mxu1 %v2735_v6 }
 0x669   :  { %v2889_v42 = vpop.f32.mrb[28].mxu1 }
 0x66a   :  { %v2323_v43 = vpop.f32.mrb[29].mxu1 }
 0x66b   :  { %v1243_v44 = vpop.f32.mrb[30].mxu1 }
 0x66c   :  { %v2324_v45 = vpop.f32.mrb[31].mxu1 }
 0x671   :  { %v2891_v46 = vpop.f32.mrb[32].mxu1 }
 0x672   :  { %v2329_v47 = vpop.f32.mrb[33].mxu1 }
 0x673   :  { %v1294_v48 = vpop.f32.mrb[34].mxu1 }
 0x674   :  { %v2330_v49 = vpop.f32.mrb[35].mxu1 }
 0x67a   :  { %v1360_v50 = vpop.f32.mrb[36].mxu1 }
 0x67b   :  { %v1361_v51 = vadd.f32 %v1360_v50, %v2825_v61  ;;  %v2335_v52 = vpop.f32.mrb[37].mxu1 }
 0x67c   :  { %v1363_v53 = vpop.f32.mrb[38].mxu1 }
 0x67d   :  { %v2336_v54 = vpop.f32.mrb[39].mxu1  ;;  %v1412_v55 = vsel %vm930_vm3, %v1361_v51, -inf }
 0x67e   :  { %1413 = vmax.xlane.f32.xlu1 %v1412_v55  ;;  %v2547_v55 = vld [vmem:[#allocation2 + $0x2c] ss:$0 sps:$4 sm:$0xff]  }
 0x682   :  { %v1406_v56 = vpop.f32.mrb[40].mxu1 }
 0x683   :  { %v1407_v57 = vadd.f32 %v1406_v56, %v2825_v61  ;;  %v2341_v59 = vpop.f32.mrb[41].mxu1  ;;  %v2247_v56 = vpack.c.bf16 %v2889_v42, %v2889_v42 }
 0x684   :  { %v1409_v60 = vpop.f32.mrb[42].mxu1 }
 0x685   :  { %v2342_v62 = vpop.f32.mrb[43].mxu1  ;;  %v1415_v63 = vsel %vm930_vm3, %v1407_v57, -inf }
 0x686   :  { %1416 = vmax.xlane.f32.xlu0 %v1415_v63 }
 0x70b   :  { %v1414_v0 = vpop.xlane.xlu1 %1413 }
 0x70c   :  { %v1418_v1 = vsub.f32 %v1361_v51, %v1414_v0 }
 0x70e   :  { %v1420_v2 = vmul.f32 1.442695, %v1418_v1 }
 0x710   :  { %2616 = vpow2.f32 %v1420_v2 }
 0x713   :  { %v1417_v3 = vpop.xlane.xlu0 %1416 }
 0x714   :  { %v1419_v4 = vsub.f32 %v1407_v57, %v1417_v3  ;;  %v2248_v57 = vpack.c.bf16 %v2891_v46, %v2891_v46 }
 0x716   :  { %v1422_v5 = vmul.f32 1.442695, %v1419_v4 }
 0x718   :  { %2618 = vpow2.f32 %v1422_v5 }
 0x71a   :  { %v2617_v7 = vpop.eup %2616 }
 0x71b   :  { %v1424_v8 = vsel %vm930_vm3, %v2617_v7, 0.0 }
 0x71c   :  { %1425 = vadd.xlane.f32.xlu0 %v1424_v8 }
 0x722   :  { %v2619_v9 = vpop.eup %2618 }
 0x723   :  { %v1427_v10 = vsel %vm930_vm3, %v2619_v9, 0.0 }
 0x724   :  { %1428 = vadd.xlane.f32.xlu1 %v1427_v10 }
 0x732   :  { %1546 = vrot.lane.b32.xlu0 %v2543_v11, %s2738_s2 }
 0x735   :  { %1541 = vrot.lane.b32.xlu1 %v2544_v12, %s2738_s2 }
 0x739   :  { %1602 = vrot.lane.b32.xlu1 %v2545_v13, %s2738_s2 }
 0x73d   :  { %1597 = vrot.lane.b32.xlu1 %v2546_v14, %s2738_s2 }
 0x7a9   :  { %v1426_v15 = vpop.xlane.xlu0 %1425 }
 0x7aa   :  { %2620 = vrcp.f32 %v1426_v15 }
 0x7ad   :  { %v1547_v24 = vpop.permute.xlu0 %1546 }
 0x7ae   :  { %v1552_v27 = vsel %vm837_vm1, %v1547_v24, 0  ;;  %v2555_v24 = vld [vmem:[#allocation9 + $0x20] ss:$8 sps:$4 sm:$0xff]  }
 0x7b1   :  { %v1429_v16 = vpop.xlane.xlu1 %1428 }
 0x7b2   :  { %2622 = vrcp.f32 %v1429_v16 }
 0x7b4   :  { %v2621_v17 = vpop.eup %2620 }
 0x7b5   :  { %v1432_v18 = vmul.f32 %v2621_v17, %v2617_v7  ;;  %v1542_v26 = vpop.permute.xlu1 %1541  ;;  %v2548_v7 = vld [vmem:[#allocation2 + $0x14] ss:$0 sps:$4 sm:$0xff]  }
 0x7b7   :  { %v1434_v20 = vpack.c.bf16 %v1432_v18, %v1432_v18 }
 0x7b9   :  { %2346 = vmatmul.mubr.msk.bf16.vlgmr.msra.gmra.mrb[44].mxu1 %vm930_vm3, %v1434_v20  ;;  %v1603_v28 = vpop.permute.xlu1 %1602  ;;  %v2551_v20 = vld [vmem:[#allocation9 + $0x4] ss:$8 sps:$4 sm:$0xff]  }
 0x7ba   :  { %2350 = vmatpush3.bf16.msra.mxu1 %v1486_v21  ;;  %2351 = vmatprep.mubr.msk.bf16.mxu1 %vm2736_vm0, %v2735_v6  ;;  %v1608_v29 = vsel %vm837_vm1, %v1603_v28, 0  ;;  %v2554_v21 = vld [vmem:[#allocation9 + $0x14] ss:$8 sps:$4 sm:$0xff]  }
 0x7bb   :  { %2355 = vmatprep.subr.bf16.mxu1 %v2735_v6  ;;  %2008 = vmatprep.subr.bf16.mxu0 %v2551_v20  ;;  %v2566_v28 = vld [vmem:[#allocation9 + $0x54] ss:$8 sps:$4 sm:$0xff]  }
 0x7bc   :  { %v2623_v22 = vpop.eup %2622  ;;  %2009 = vmatpush1.bf16.msra.mxu0 %v2549_v19 }
 0x7bd   :  { %v1433_v23 = vmul.f32 %v2623_v22, %v2619_v9  ;;  %v1598_v30 = vpop.permute.xlu1 %1597  ;;  %v2552_v22 = vld [vmem:[#allocation9 + $0x10] ss:$8 sps:$4 sm:$0xff]   ;;  %2010 = vmatprep.subr.bf16.mxu0 %v2554_v21 }
 0x7bf   :  { %v1435_v25 = vpack.c.bf16 %v1433_v23, %v1433_v23  ;;  %v2557_v23 = vld [vmem:[#allocation9 + $0x24] ss:$8 sps:$4 sm:$0xff]  }
 0x7c0   :  { %2011 = vmatpush1.bf16.msra.mxu0 %v2552_v22 }
 0x7c1   :  { %2352 = vmatmul.mubr.msk.bf16.vlgmr.msra.gmra.mrb[48].mxu1 %vm930_vm3, %v1435_v25  ;;  %2012 = vmatprep.subr.bf16.mxu0 %v2557_v23  ;;  %v2560_v25 = vld [vmem:[#allocation9 + $0x34] ss:$8 sps:$4 sm:$0xff]  }
 0x7c2   :  { %2357 = vmatprep.mubr.msk.bf16.mxu1 %vm2736_vm0, %v2735_v6 }
 0x7c3   :  { %2356 = vmatpush3.bf16.xpose.msra.mxu1 %v1552_v27  ;;  %v2561_v27 = vld [vmem:[#allocation9 + $0x40] ss:$8 sps:$4 sm:$0xff]  }
 0x7c4   :  { %2361 = vmatprep.subr.bf16.mxu1 %v2735_v6  ;;  %2013 = vmatpush1.bf16.msra.mxu0 %v2555_v24 }
 0x7c5   :  { %2014 = vmatprep.subr.bf16.mxu0 %v2560_v25 }
 0x7ca   :  { %2358 = vmatmul.mubr.msk.bf16.vlgmr.msra.gmra.mrb[52].mxu1 %vm837_vm1, %v1542_v26  ;;  %v2558_v26 = vld [vmem:[#allocation9 + $0x30] ss:$8 sps:$4 sm:$0xff]  }
 0x7cb   :  { %2362 = vmatpush3.bf16.xpose.msra.mxu1 %v1608_v29  ;;  %2363 = vmatprep.mubr.msk.bf16.mxu1 %vm2736_vm0, %v2735_v6  ;;  %v2564_v29 = vld [vmem:[#allocation9 + $0x50] ss:$8 sps:$4 sm:$0xff]  }
 0x7cc   :  { %2367 = vmatprep.subr.bf16.mxu1 %v2735_v6  ;;  %2015 = vmatpush1.bf16.msra.mxu0 %v2558_v26 }
 0x7d2   :  { %2364 = vmatmul.mubr.msk.bf16.vlgmr.msra.gmra.mrb[56].mxu1 %vm837_vm1, %v1598_v30  ;;  %v2569_v30 = vld [vmem:[#allocation9 + $0x64] ss:$8 sps:$4 sm:$0xff]  }
 0x7d3   :  { %2369 = vmatprep.mubr.msk.bf16.mxu1 %vm2736_vm0, %v2735_v6 }
 0x88c   :  { %v1476_v31 = vpop.f32.mrb[44].mxu1 }
 0x88d   :  { %v1528_v32 = vpack.c.bf16 %v1476_v31, %v1476_v31  ;;  %v2347_v33 = vpop.f32.mrb[45].mxu1  ;;  %v2567_v31 = vld [vmem:[#allocation9 + $0x60] ss:$8 sps:$4 sm:$0xff]  }
 0x88e   :  { %v1479_v34 = vpop.f32.mrb[46].mxu1  ;;  %v2570_v33 = vld [vmem:[#allocation9 + $0x70] ss:$8 sps:$4 sm:$0xff]  }
 0x88f   :  { %1530 = vst.msk [vmem:[#allocation3 + $0x4] sm:$0xf] %vm1050_vm5, %v1528_v32  ;;  %v2348_v35 = vpop.f32.mrb[47].mxu1  ;;  %v2572_v32 = vld [vmem:[#allocation9 + $0x74] ss:$8 sps:$4 sm:$0xff]  }
 0x890   :  { %v2575_v34 = vld [vmem:[#allocation9 + $0x84] ss:$8 sps:$4 sm:$0xff]   ;;  %v2573_v35 = vld [vmem:[#allocation9 + $0x80] ss:$8 sps:$4 sm:$0xff]  }
 0x894   :  { %v1522_v36 = vpop.f32.mrb[48].mxu1 }
 0x895   :  { %v1529_v37 = vpack.c.bf16 %v1522_v36, %v1522_v36  ;;  %v2353_v38 = vpop.f32.mrb[49].mxu1  ;;  %v2578_v36 = vld [vmem:[#allocation9 + $0x94] ss:$8 sps:$4 sm:$0xff]  }
 0x896   :  { %v1525_v39 = vpop.f32.mrb[50].mxu1  ;;  %v2581_v38 = vld [vmem:[#allocation9 + $0xa4] ss:$8 sps:$4 sm:$0xff]  }
 0x897   :  { %1531 = vst.msk [vmem:[#allocation3 + $0xc] sm:$0xf] %vm1050_vm5, %v1529_v37  ;;  %v2354_v40 = vpop.f32.mrb[51].mxu1  ;;  %v2576_v37 = vld [vmem:[#allocation9 + $0x90] ss:$8 sps:$4 sm:$0xff]  }
 0x898   :  { %v2579_v39 = vld [vmem:[#allocation9 + $0xa0] ss:$8 sps:$4 sm:$0xff]   ;;  %v2584_v40 = vld [vmem:[#allocation9 + $0xb4] ss:$8 sps:$4 sm:$0xff]  }
 0x89d   :  { %v1588_v41 = vpop.f32.mrb[52].mxu1 }
 0x89e   :  { %v1589_v43 = vadd.f32 %v1588_v41, %v2825_v61  ;;  %v2359_v44 = vpop.f32.mrb[53].mxu1  ;;  %v2582_v41 = vld [vmem:[#allocation9 + $0xb0] ss:$8 sps:$4 sm:$0xff]  }
 0x89f   :  { %v1591_v45 = vpop.f32.mrb[54].mxu1  ;;  %v2587_v44 = vld [vmem:[#allocation9 + $0xc4] ss:$8 sps:$4 sm:$0xff]  }
 0x8a0   :  { %v2360_v47 = vpop.f32.mrb[55].mxu1  ;;  %v1650_v48 = vsel %vm930_vm3, %v1589_v43, -inf  ;;  %v2590_v45 = vld [vmem:[#allocation9 + $0xd4] ss:$8 sps:$4 sm:$0xff]  }
 0x8a1   :  { %1651 = vmax.xlane.f32.xlu0 %v1650_v48  ;;  %v2588_v47 = vld [vmem:[#allocation9 + $0xd0] ss:$8 sps:$4 sm:$0xff]   ;;  %v2591_v48 = vld [vmem:[#allocation9 + $0xe0] ss:$8 sps:$4 sm:$0xff]  }
 0x8a5   :  { %v1644_v49 = vpop.f32.mrb[56].mxu1 }
 0x8a6   :  { %v1645_v50 = vadd.f32 %v1644_v49, %v2825_v61  ;;  %v2365_v51 = vpop.f32.mrb[57].mxu1  ;;  %v2593_v49 = vld [vmem:[#allocation9 + $0xe4] ss:$8 sps:$4 sm:$0xff]  }
 0x8a7   :  { %v1647_v52 = vpop.f32.mrb[58].mxu1 }
 0x8a8   :  { %v2366_v53 = vpop.f32.mrb[59].mxu1  ;;  %v1653_v54 = vsel %vm930_vm3, %v1645_v50, -inf }
 0x8a9   :  { %1654 = vmax.xlane.f32.xlu1 %v1653_v54  ;;  %v2594_v54 = vld [vmem:[#allocation9 + $0xf0] ss:$8 sps:$4 sm:$0xff]  }
 0x8ba   :  { %1728 = vrot.lane.b32.xlu1 %v2547_v55, %s2738_s2 }
 0x8be   :  { %1305 = vrot.lane.b32.xlu1 %v2247_v56, %s2738_s2 }
 0x8c2   :  { %1307 = vrot.lane.b32.xlu1 %v2248_v57, %s2738_s2 }
 0x92e   :  { %v1652_v61 = vpop.xlane.xlu0 %1651 }
 0x92f   :  { %v1656_v59 = vsub.f32 %v1589_v43, %v1652_v61  ;;  %v2585_v43 = vld [vmem:[#allocation9 + $0xc0] ss:$8 sps:$4 sm:$0xff]  }
 0x931   :  { %v1658_v60 = vmul.f32 1.442695, %v1656_v59 }
 0x933   :  { %2624 = vpow2.f32 %v1658_v60 }
 0x936   :  { %v1655_v62 = vpop.xlane.xlu1 %1654 }
 0x937   :  { %v1657_v63 = vsub.f32 %v1645_v50, %v1655_v62  ;;  %v2596_v50 = vld [vmem:[#allocation9 + $0xf4] ss:$8 sps:$4 sm:$0xff]  }
 0x939   :  { %v1660_v0 = vmul.f32 1.442695, %v1657_v63 }
 0x93a   :  { %v1729_v1 = vpop.permute.xlu1 %1728 }
 0x93b   :  { %2626 = vpow2.f32 %v1660_v0  ;;  %v1734_v15 = vsel %vm958_vm4, %v1729_v1, 0 }
 0x93d   :  { %v2625_v2 = vpop.eup %2624 }
 0x93e   :  { %v1306_v3 = vpop.permute.xlu1 %1305  ;;  %v1662_v42 = vsel %vm930_vm3, %v2625_v2, 0.0 }
 0x93f   :  { %1312 = vst.msk [vmem:[#allocation3] sm:$0xf] %vm1311_vm6, %v1306_v3  ;;  %1663 = vadd.xlane.f32.xlu0 %v1662_v42  ;;  %v1830_v3 = vsub.s32 0, %v2822_v58  ;;  %v1826_v42 = vld [vmem:[%s2973_s3] sm:$0x3]  ;;  %s2698_s3 = scalar_lea.vmem %s2061_s6, 512 }
 0x940   :  { %p2699_p10 = scmp.ne.s32.totalorder %s2061_s6, %s2698_s3  ;;  %p2704_p12 = scmp.lt.s32.totalorder %s2698_s3, %s2698_s3 }
 0x942   :  { %v1308_v46 = vpop.permute.xlu1 %1307  ;;  %p2705_p13 = por %p2704_p12, %p2703_p11 }
 0x943   :  { %1313 = vst.msk [vmem:[#allocation3 + $0x8] sm:$0xf] %vm1311_vm6, %v1308_v46  ;;  %v1834_v46 = vsub.s32 1, %v2822_v58 }
 0x944   :  { %p2706_p0 = pnand %p2705_p13, %p2699_p10 }
 0x945   :  { %v2627_v4 = vpop.eup %2626 }
 0x946   :  { %v1665_v5 = vsel %vm930_vm3, %v2627_v4, 0.0 }
 0x947   :  { %1666 = vadd.xlane.f32.xlu0 %v1665_v5  ;;  %v1835_v5 = vrot.slane %v1826_v42, %v1834_v46 }
 0x94a   :  { %v2597_v1 = vld [vmem:[#allocation3] ss:$8 sps:$4 sm:$0xff]  }
 0x95d   :  { %1677 = vrot.lane.b32.xlu0 %v2548_v7, %s2738_s2 }
 0x9cc   :  { %v1664_v8 = vpop.xlane.xlu0 %1663 }
 0x9cd   :  { %2628 = vrcp.f32 %v1664_v8 }
 0x9d4   :  { %v1667_v9 = vpop.xlane.xlu0 %1666 }
 0x9d5   :  { %2630 = vrcp.f32 %v1667_v9 }
 0x9d7   :  { %v2629_v10 = vpop.eup %2628 }
 0x9d8   :  { %v1670_v11 = vmul.f32 %v2629_v10, %v2625_v2  ;;  %v1678_v12 = vpop.permute.xlu0 %1677 }
 0x9d9   :  { %v1683_v13 = vsel %vm958_vm4, %v1678_v12, 0 }
 0x9da   :  { %2368 = vmatpush3.bf16.msra.mxu1 %v1683_v13  ;;  %v1672_v14 = vpack.c.bf16 %v1670_v11, %v1670_v11 }
 0x9db   :  { %2373 = vmatprep.subr.bf16.mxu1 %v2735_v6 }
 0x9dd   :  { %2370 = vmatmul.mubr.msk.bf16.vlgmr.msra.gmra.mrb[60].mxu1 %vm930_vm3, %v1672_v14 }
 0x9de   :  { %2374 = vmatpush3.bf16.msra.mxu1 %v1734_v15  ;;  %2375 = vmatprep.mubr.msk.bf16.mxu1 %vm2736_vm0, %v2735_v6  ;;  %v2563_v6 = vld [vmem:[#allocation9 + $0x44] ss:$8 sps:$4 sm:$0xff]  }
 0x9df   :  { %v2631_v16 = vpop.eup %2630  ;;  %2016 = vmatprep.subr.bf16.mxu0 %v2563_v6 }
 0x9e0   :  { %v1671_v17 = vmul.f32 %v2631_v16, %v2627_v4  ;;  %2017 = vmatpush1.bf16.msra.mxu0 %v2561_v27  ;;  %v1831_v4 = vrot.slane %v1826_v42, %v1830_v3 }
 0x9e1   :  { %2018 = vmatprep.subr.bf16.mxu0 %v2566_v28 }
 0x9e2   :  { %v1673_v18 = vpack.c.bf16 %v1671_v17, %v1671_v17 }
 0x9e4   :  { %2019 = vmatpush1.bf16.msra.mxu0 %v2564_v29 }
 0x9e5   :  { %2376 = vmatmul.mubr.msk.bf16.vlgmr.msra.gmra.mrb[64].mxu1 %vm930_vm3, %v1673_v18  ;;  %2020 = vmatprep.subr.bf16.mxu0 %v2569_v30 }
 0x9e8   :  { %2021 = vmatpush1.bf16.msra.mxu0 %v2567_v31 }
 0x9e9   :  { %2022 = vmatprep.subr.bf16.mxu0 %v2572_v32 }
 0x9ec   :  { %2023 = vmatpush1.bf16.msra.mxu0 %v2570_v33 }
 0x9ed   :  { %2024 = vmatprep.subr.bf16.mxu0 %v2575_v34 }
 0x9f0   :  { %2025 = vmatpush1.bf16.msra.mxu0 %v2573_v35 }
 0x9f1   :  { %2026 = vmatprep.subr.bf16.mxu0 %v2578_v36 }
 0x9f4   :  { %2027 = vmatpush1.bf16.msra.mxu0 %v2576_v37 }
 0x9f5   :  { %2028 = vmatprep.subr.bf16.mxu0 %v2581_v38 }
 0x9f8   :  { %2029 = vmatpush1.bf16.msra.mxu0 %v2579_v39 }
 0x9f9   :  { %2030 = vmatprep.subr.bf16.mxu0 %v2584_v40 }
 0x9fc   :  { %2031 = vmatpush1.bf16.msra.mxu0 %v2582_v41 }
 0x9fd   :  { %2032 = vmatprep.subr.bf16.mxu0 %v2587_v44 }
 0xa00   :  { %2033 = vmatpush1.bf16.msra.mxu0 %v2585_v43 }
 0xa01   :  { %2034 = vmatprep.subr.bf16.mxu0 %v2590_v45 }
 0xa04   :  { %2035 = vmatpush1.bf16.msra.mxu0 %v2588_v47 }
 0xa05   :  { %2036 = vmatprep.subr.bf16.mxu0 %v2593_v49 }
 0xa08   :  { %2037 = vmatpush1.bf16.msra.mxu0 %v2591_v48 }
 0xa09   :  { %2038 = vmatprep.subr.bf16.mxu0 %v2596_v50 }
 0xa0c   :  { %2039 = vmatpush1.bf16.msra.mxu0 %v2594_v54 }
 0xab0   :  { %v1719_v51 = vpop.f32.mrb[60].mxu1 }
 0xab1   :  { %v2249_v52 = vpack.c.bf16 %v1719_v51, %v1719_v51  ;;  %v2371_v53 = vpop.f32.mrb[61].mxu1 }
 0xab2   :  { %v1722_v55 = vpop.f32.mrb[62].mxu1 }
 0xab3   :  { %1784 = vrot.lane.b32.xlu0 %v2249_v52, %s2738_s2  ;;  %v2372_v56 = vpop.f32.mrb[63].mxu1 }
 0xab8   :  { %v1770_v57 = vpop.f32.mrb[64].mxu1 }
 0xab9   :  { %v2250_v61 = vpack.c.bf16 %v1770_v57, %v1770_v57  ;;  %v2377_v59 = vpop.f32.mrb[65].mxu1 }
 0xaba   :  { %v1773_v60 = vpop.f32.mrb[66].mxu1 }
 0xabb   :  { %1786 = vrot.lane.b32.xlu1 %v2250_v61, %s2738_s2  ;;  %v2378_v62 = vpop.f32.mrb[67].mxu1 }
 0xb25   :  { %v1785_v63 = vpop.permute.xlu0 %1784 }
 0xb26   :  { %1790 = vst.msk [vmem:[#allocation3 + $0x4] sm:$0xf] %vm1311_vm6, %v1785_v63 }
 0xb2d   :  { %v1787_v0 = vpop.permute.xlu1 %1786 }
 0xb2e   :  { %1791 = vst.msk [vmem:[#allocation3 + $0xc] sm:$0xf] %vm1311_vm6, %v1787_v0 }
 0xb35   :  { %v2599_v2 = vld [vmem:[#allocation3 + $0x4] ss:$8 sps:$4 sm:$0xff]  }
 0xb36   :  { %2040 = vmatprep.mubr.bf16.mxu0 %v2599_v2 }
 0xb37   :  { %2041 = vmatmul.mubr.bf16.vlgmr.msra.gmra.mrb[8].mxu0 %v2597_v1 }
 0xc0a   :  { %v2042_v7 = vpop.f32.mrb[8].mxu0 }
 0xc0b   :  { %v2043_v8 = vadd.f32 %v2042_v7, %v1831_v4  ;;  %v2044_v9 = vpop.f32.mrb[9].mxu0 }
 0xc0c   :  { %v2045_v10 = vadd.f32 %v2044_v9, %v1835_v5  ;;  %v2046_v11 = vpop.f32.mrb[10].mxu0 }
 0xc0d   :  { %2051 = vst [vmem:[#allocation10] sm:$0xff] %v2043_v8  ;;  %v2047_v12 = vadd.f32 %v2046_v11, %v1831_v4  ;;  %v2048_v13 = vpop.f32.mrb[11].mxu0 }
 0xc0e   :  { %2052 = vst [vmem:[#allocation10 + $0x8] sm:$0xff] %v2045_v10  ;;  %v2049_v14 = vadd.f32 %v2048_v13, %v1835_v5 }
 0xc0f   :  { %2053 = vst [vmem:[#allocation10 + $0x10] sm:$0xff] %v2047_v12 }
 0xc10   :  { %2054 = vst [vmem:[#allocation10 + $0x18] sm:$0xff] %v2049_v14 }
 0xc11   :  { %2709 = shalt.err (!%p2706_p0)
}
 0xc12   :  { %s2710_s9 = scalar_lea.hbm %s2974_s4, 512 }
 0xc13   :  { %p2711_p1 = scmp.ne.s32.totalorder %s2974_s4, %s2710_s9  ;;  %p2714_p2 = scmp.lt.u32.totalorder %s2710_s9, %s2974_s4 }
 0xc15   :  { %p2716_p3 = pnand %p2714_p2, %p2711_p1 }
 0xc17   :  { %2719 = shalt.err (!%p2716_p3)
}
 0xc18   :  { %2066 = dma.vmem_to_hbm [thread:$0]  %s2061_s6, 512, %s2974_s4, [#allocation6], %s2730_s1, %s2730_s1, %s2731_s13  }
 0xc19   :  { %2724 = dma.done.wait [#allocation6], 512  }
 0xc1a   :  { %2725 = vsyncadd [#allocation6], 4294966784 }
 0xc1b   :  { %2070 = vsyncpa [#allocation5], 1 }
 0xc1c   :  { %2071 = vsyncpa [#allocation8], 1 }
 0xc1d   :  { %2072 = vsyncpa [#allocation6], 1 }

</bundles_post_ra>
